<compile_context>
chip_gen: v7x
topology: tpu7x:2x2x1
jax: 0.10.0
libtpu: 0.0.40
codegen_flags: <defaults>
</compile_context>

<pallas_src>
import jax
import jax.numpy as jnp
from jax.experimental import pallas as pl
from jax.experimental.pallas import tpu as pltpu

D_IN, H1, H2, H3, D_OUT = 384, 192, 96, 48, 1


def _mlp_tail(h, w2, b2, w3, b3, w4r, b4):
    """Layers 2..4 on an (M, H1) activation block -> (1, M) sigmoid probabilities."""
    h = jnp.dot(h.astype(jnp.bfloat16), w2,
                preferred_element_type=jnp.float32) + b2
    h = jnp.maximum(h, 0.0)                                           # (M, H2)
    h = jnp.dot(h.astype(jnp.bfloat16), w3,
                preferred_element_type=jnp.float32) + b3
    h = jnp.maximum(h, 0.0)                                           # (M, H3)
    # Contract H3 with the row dim on the MXU "N" side so the result is lane-dense
    # ((8, M)); only 8 (mostly zero) LHS rows stream through the MXU.
    # TODO(synk): if MLIR shows an explicit (M,48)->(48,M) relayout here, fall back to
    # the natural (M,48)x(48,8) orientation + masked stores (output is ~2% of traffic).
    row = jax.lax.dot_general(w4r, h.astype(jnp.bfloat16),
                              dimension_numbers=(((1,), (1,)), ((), ())),
                              preferred_element_type=jnp.float32)     # (8, M)
    return jax.nn.sigmoid(row[0:1, :] + b4)                           # (1, M)


def mlp_kernel(y_ref, zx_ref, w1y_ref, w2_ref, b2_ref, w3_ref, b3_ref,
               w4r_ref, b4_ref, o_ref):
    # y_ref : (bt, tm, Dy) f32/bf16  -- y rows for bt batch elements
    # zx_ref: (bt, 4, H1)  f32       -- x @ W1x + b1 for the 4 anchors of each batch elem
    # w1y   : (Dy,H1) bf16, w2: (H1,H2) bf16, w3: (H2,H3) bf16
    # w4r   : (8, H3) bf16           -- row 0 = W4^T, rows 1..7 zero
    # b4    : (1,) f32 in SMEM
    # o_ref : (bt, 4, tm)  f32       -- lane-dense sigmoid outputs
    bt, tm, dy = y_ref.shape
    h1n = zx_ref.shape[-1]
    w2, b2 = w2_ref[...], b2_ref[...]
    w3, b3 = w3_ref[...], b3_ref[...]
    w4r, b4 = w4r_ref[...], b4_ref[0]

    # Layer 1 (y part): one matmul over all bt*tm y rows of this tile.
    zy = jnp.dot(y_ref[...].reshape(bt * tm, dy).astype(jnp.bfloat16),
                 w1y_ref[...], preferred_element_type=jnp.float32)    # (bt*tm, H1)

    if tm % 8 == 0:
        # Fast path: fold batch & anchors into one M = bt*4*tm matmul per layer.
        h = zy.reshape(bt, 1, tm, h1n) + zx_ref[...].reshape(bt, 4, 1, h1n)
        h = jnp.maximum(h, 0.0).reshape(bt * 4 * tm, h1n)             # (bt*4*tm, H1)
        probs = _mlp_tail(h, w2, b2, w3, b3, w4r, b4)                 # (1, bt*4*tm)
        for b in range(bt):                                           # unrolled at trace time
            for a in range(4):
                s = (b * 4 + a) * tm
                o_ref[b, a:a + 1, :] = probs[:, s:s + tm]
    else:
        # Fallback for tiny sublane-unaligned full-extent tiles (wrapper guarantees bt==1):
        # per-anchor loop, no stacked reshape.
        assert bt == 1
        zx = zx_ref[0]                                                # (4, H1)
        for a in range(4):
            h = jnp.maximum(zy + zx[a:a + 1, :], 0.0)                 # (tm, H1)
            o_ref[0, a:a + 1, :] = _mlp_tail(h, w2, b2, w3, b3, w4r, b4)


def _vmem_capacity_bytes():
    try:
        return int(pltpu.get_tpu_info().vmem_capacity_bytes)
    except Exception:
        return 64 * 1024 * 1024          # conservative default (v7x-sized)


def _is_v6_chip():
    try:
        return "v6" in jax.devices()[0].device_kind.lower()
    except Exception:
        return False


def points_classification(x, y, params):
    """Forward pass of `pointsclassification`.  x: (bs,4,Dx) f32, y: (bs*R,Ny1,Dy) f32."""
    w1, b1, w2, b2, w3, b3, w4, b4 = params
    bs, A, Dx = x.shape
    assert A == 4
    Ny0, Ny1, Dy = y.shape
    assert Ny0 % bs == 0
    R = Ny0 // bs
    d_in, h1 = w1.shape
    h2, h3 = w2.shape[1], w3.shape[1]
    assert Dx + Dy == d_in
    assert w4.shape == (h3, 1), "final layer must produce a single logit"

    # ---- per-chip tiling / VMEM budget (v7x: 64 MiB VMEM per TC, v5e/v6e: 128 MiB) ----
    if _vmem_capacity_bytes() >= 96 * 1024 * 1024:
        tm_max, vmem_limit = 4096, 64 * 1024 * 1024
    else:
        tm_max, vmem_limit = 2048, 44 * 1024 * 1024

    rows = R * Ny1                                   # y rows per batch element
    # --- row tiling: valid tiles are tm == rows (full extent) or a multiple of 128
    # (out-block last-dim constraint).  Prefer sublane-aligned tiles so the kernel
    # can use the stacked (batch+anchor folded into M) fast path. -----------------
    if rows > tm_max:
        tm = tm_max
    elif rows % 8 != 0 and rows > 256:
        tm = min(tm_max, (((rows + 1) // 2) + 127) // 128 * 128)
    else:
        tm = rows
    n_row = pl.cdiv(rows, tm)

    # --- batch stacking (rows << 128): keep the MXU M dim and lane-dense stores useful
    bt = 1
    if n_row == 1 and rows < 128 and rows % 8 == 0 and bs > 1:
        bt = min(bs, 8, max(1, tm_max // max(rows, 1)))
    n_bat = pl.cdiv(bs, bt)

    # --- v7x megacore: ensure >= 2 grid steps (harmless extra step on 1-TC chips) ---
    if n_bat * n_row < 2:
        if bt > 1:
            bt = (bt + 1) // 2
            n_bat = pl.cdiv(bs, bt)
        elif rows > 256:
            tm = (((rows + 1) // 2) + 127) // 128 * 128
            n_row = pl.cdiv(rows, tm)

    # Split first layer:  cat(y, x) @ W1 + b1 == y @ W1[:Dy] + (x @ W1[Dy:] + b1)
    w1y = w1[:Dy].astype(jnp.bfloat16)
    zx = jnp.dot(x.astype(jnp.bfloat16), w1[Dy:].astype(jnp.bfloat16),
                 preferred_element_type=jnp.float32) + b1             # (bs, 4, H1) f32

    y3 = y.reshape(bs, rows, Dy)                                      # metadata-only reshape
    if _is_v6_chip() and y3.dtype == jnp.float32:
        # v6e only: halve the dominant HBM stream (numerics unchanged — the kernel
        # feeds the MXU bf16 either way).
        y3 = y3.astype(jnp.bfloat16)

    w2b = w2.astype(jnp.bfloat16)
    w3b = w3.astype(jnp.bfloat16)
    # Last-layer weight as an 8-row matrix (sublane-tile friendly), row 0 = W4^T.
    w4r = jnp.zeros((8, h3), jnp.bfloat16).at[0].set(w4[:, 0].astype(jnp.bfloat16))
    b4s = b4.reshape(-1)                                              # (1,) scalar for SMEM

    flops = bs * rows * (2 * Dy * h1 + 4 * (2 * h1 * h2 + 2 * h2 * h3 + 2 * h3))
    bytes_accessed = (bs * rows * Dy * y3.dtype.itemsize              # y, streamed once
                      + bs * 4 * rows * 4                             # output (f32)
                      + bs * 4 * h1 * 4                               # zx
                      + (Dy * h1 + h1 * h2 + h2 * h3 + 8 * h3) * 2    # bf16 weights
                      + (h2 + h3 + 1) * 4)                            # biases
    cost = pl.CostEstimate(flops=int(flops),
                           transcendentals=int(bs * rows * 4),
                           bytes_accessed=int(bytes_accessed))

    def full(shape):
        return pl.BlockSpec(shape, lambda b, j: (0,) * len(shape))

    out_ld = pl.pallas_call(
        mlp_kernel,
        out_shape=jax.ShapeDtypeStruct((bs, 4, rows), jnp.float32),
        grid_spec=pltpu.PrefetchScalarGridSpec(
            num_scalar_prefetch=0,
            grid=(n_bat, n_row),
            in_specs=[
                pl.BlockSpec((bt, tm, Dy), lambda b, j: (b, j, 0)),   # y rows
                pl.BlockSpec((bt, 4, h1), lambda b, j: (b, 0, 0)),    # zx (per batch elem)
                full((Dy, h1)),
                full((h1, h2)), full((1, h2)),
                full((h2, h3)), full((1, h3)),
                full((8, h3)),
                pl.BlockSpec(memory_space=pltpu.MemorySpace.SMEM),    # b4 scalar
            ],
            out_specs=pl.BlockSpec((bt, 4, tm), lambda b, j: (b, 0, j)),
        ),
        compiler_params=pltpu.CompilerParams(
            dimension_semantics=("parallel", "parallel"),
            vmem_limit_bytes=vmem_limit),
        cost_estimate=cost,
    )(y3, zx, w1y, w2b, b2, w3b, b3, w4r, b4s)

    # (bs, 4, R*Ny1) -> (bs*R, 4, Ny1)  (matches torch's x.view(-1, 4, Ny1))
    out = out_ld.reshape(bs, 4, R, Ny1).transpose(0, 2, 1, 3)
    return out.reshape(bs * R, 4, Ny1)


def init_params(key):
    dims = [(D_IN, H1), (H1, H2), (H2, H3), (H3, D_OUT)]
    params = []
    for i, (din, dout) in enumerate(dims):
        kw, kb = jax.random.split(jax.random.fold_in(key, i))
        scale = 1.0 / jnp.sqrt(din)
        w = jax.random.uniform(kw, (din, dout), jnp.float32, -scale, scale)
        b = jax.random.uniform(kb, (1, dout), jnp.float32, -scale, scale)
        params += [w, b]
    return tuple(params)


def ref_fp32(x, y, params):
    """Original full-precision concatenated-features formulation (the torch spec)."""
    w1, b1, w2, b2, w3, b3, w4, b4 = params
    bs, _, Dx = x.shape
    Ny0, Ny1, Dy = y.shape
    R = Ny0 // bs
    feats = jnp.concatenate([
        jnp.broadcast_to(y.reshape(bs, R, 1, Ny1, Dy), (bs, R, 4, Ny1, Dy)),
        jnp.broadcast_to(x[:, None, :, None, :], (bs, R, 4, Ny1, Dx)),
    ], axis=-1)
    h = jnp.maximum(feats @ w1 + b1, 0.0)
    h = jnp.maximum(h @ w2 + b2, 0.0)
    h = jnp.maximum(h @ w3 + b3, 0.0)
    out = jax.nn.sigmoid(h @ w4 + b4)                                 # (bs,R,4,Ny1,1)
    return out[..., 0].reshape(bs * R, 4, Ny1)


def ref_bf16(x, y, params):
    """Mirrors the kernel's bf16-operand / f32-accumulation math."""
    w1, b1, w2, b2, w3, b3, w4, b4 = params
    bf = jnp.bfloat16
    bs, _, Dx = x.shape
    Ny0, Ny1, Dy = y.shape
    R = Ny0 // bs
    zx = jnp.dot(x.astype(bf), w1[Dy:].astype(bf),
                 preferred_element_type=jnp.float32) + b1             # (bs,4,H1)
    zy = jnp.dot(y.reshape(bs, R * Ny1, Dy).astype(bf), w1[:Dy].astype(bf),
                 preferred_element_type=jnp.float32)                  # (bs,M,H1)
    h = jnp.maximum(zy[:, None, :, :] + zx[:, :, None, :], 0.0)       # (bs,4,M,H1)
    h = jnp.maximum(jnp.dot(h.astype(bf), w2.astype(bf),
                            preferred_element_type=jnp.float32) + b2, 0.0)
    h = jnp.maximum(jnp.dot(h.astype(bf), w3.astype(bf),
                            preferred_element_type=jnp.float32) + b3, 0.0)
    logit = jnp.einsum('bamh,h->bam', h.astype(bf), w4[:, 0].astype(bf),
                       preferred_element_type=jnp.float32) + b4[0, 0]
    p = jax.nn.sigmoid(logit)                                         # (bs,4,M)
    return p.reshape(bs, 4, R, Ny1).transpose(0, 2, 1, 3).reshape(bs * R, 4, Ny1)


if __name__ == "__main__":
    key = jax.random.PRNGKey(0)
    k_x, k_y, k_p = jax.random.split(key, 3)
    params = init_params(k_p)

    Dx = Dy = 192                                     # Dx + Dy = 384 (fixed by the MLP)
    # (bs, R, Ny1) cases cover: batch stacking with a ragged batch tile, ragged row
    # tiles with rows % 8 != 0, and the tiny single-step fallback.
    cases = [(3, 3, 8), (1, 5, 60), (1, 1, 8)]
    for i, (bs, R, Ny1) in enumerate(cases):
        kx = jax.random.fold_in(k_x, i)
        ky = jax.random.fold_in(k_y, i)
        x = jax.random.normal(kx, (bs, 4, Dx), jnp.float32)
        y = jax.random.normal(ky, (bs * R, Ny1, Dy), jnp.float32)

        out = points_classification(x, y, params)
        jax.block_until_ready(out)
        assert out.shape == (bs * R, 4, Ny1), out.shape

        err16 = float(jnp.max(jnp.abs(out - ref_bf16(x, y, params))))
        assert err16 < 3e-3, (i, err16)
        err32 = float(jnp.max(jnp.abs(out - ref_fp32(x, y, params))))
        assert err32 < 5e-2, (i, err32)

    print("KERNEL_OK")
</pallas_src>

<mosaic_0001>
module attributes {stable_mosaic.version = 11 : i64} {
  func.func @mlp_kernel(%arg0: i32, %arg1: i32, %arg2: memref<2x24x192xf32, #tpu.memory_space<vmem>>, %arg3: memref<2x4x192xf32, #tpu.memory_space<vmem>>, %arg4: memref<192x192xbf16, #tpu.memory_space<vmem>>, %arg5: memref<192x96xbf16, #tpu.memory_space<vmem>>, %arg6: memref<1x96xf32, #tpu.memory_space<vmem>>, %arg7: memref<96x48xbf16, #tpu.memory_space<vmem>>, %arg8: memref<1x48xf32, #tpu.memory_space<vmem>>, %arg9: memref<8x48xbf16, #tpu.memory_space<vmem>>, %arg10: memref<1xf32, #tpu.memory_space<smem>>, %arg11: memref<2x4x24xf32, #tpu.memory_space<vmem>>) attributes {dimension_semantics = [#tpu.dimension_semantics<parallel>, #tpu.dimension_semantics<parallel>], iteration_bounds = array<i64: 2, 1>, scalar_prefetch = 0 : i64, scratch_operands = 0 : i64, tpu.core_type = #tpu.core_type<tc>, window_params = [{transform_indices = @transform_0, window_bounds = array<i64: 2, 24, 192>}, {transform_indices = @transform_1, window_bounds = array<i64: 2, 4, 192>}, {pipeline_mode = #tpu.pipeline_mode<synchronous>, transform_indices = @transform_2, window_bounds = array<i64: 192, 192>}, {pipeline_mode = #tpu.pipeline_mode<synchronous>, transform_indices = @transform_3, window_bounds = array<i64: 192, 96>}, {pipeline_mode = #tpu.pipeline_mode<synchronous>, transform_indices = @transform_4, window_bounds = array<i64: 1, 96>}, {pipeline_mode = #tpu.pipeline_mode<synchronous>, transform_indices = @transform_5, window_bounds = array<i64: 96, 48>}, {pipeline_mode = #tpu.pipeline_mode<synchronous>, transform_indices = @transform_6, window_bounds = array<i64: 1, 48>}, {pipeline_mode = #tpu.pipeline_mode<synchronous>, transform_indices = @transform_7, window_bounds = array<i64: 8, 48>}, {transform_indices = @transform_8, window_bounds = array<i64: 1>}, {transform_indices = @transform_9, window_bounds = array<i64: 2, 4, 24>}]} {
    %c0 = arith.constant 0 : index
    %c0_0 = arith.constant 0 : index
    %0 = vector.load %arg5[%c0, %c0_0] : memref<192x96xbf16, #tpu.memory_space<vmem>>, vector<192x96xbf16>
    %c0_1 = arith.constant 0 : index
    %c0_2 = arith.constant 0 : index
    %1 = vector.load %arg6[%c0_1, %c0_2] : memref<1x96xf32, #tpu.memory_space<vmem>>, vector<1x96xf32>
    %c0_3 = arith.constant 0 : index
    %c0_4 = arith.constant 0 : index
    %2 = vector.load %arg7[%c0_3, %c0_4] : memref<96x48xbf16, #tpu.memory_space<vmem>>, vector<96x48xbf16>
    %c0_5 = arith.constant 0 : index
    %c0_6 = arith.constant 0 : index
    %3 = vector.load %arg8[%c0_5, %c0_6] : memref<1x48xf32, #tpu.memory_space<vmem>>, vector<1x48xf32>
    %c0_7 = arith.constant 0 : index
    %c0_8 = arith.constant 0 : index
    %4 = vector.load %arg9[%c0_7, %c0_8] : memref<8x48xbf16, #tpu.memory_space<vmem>>, vector<8x48xbf16>
    %c0_9 = arith.constant 0 : index
    %5 = memref.load %arg10[%c0_9] : memref<1xf32, #tpu.memory_space<smem>>
    %c0_10 = arith.constant 0 : index
    %c0_11 = arith.constant 0 : index
    %c0_12 = arith.constant 0 : index
    %6 = vector.load %arg2[%c0_10, %c0_11, %c0_12] : memref<2x24x192xf32, #tpu.memory_space<vmem>>, vector<2x24x192xf32>
    %7 = vector.shape_cast %6 : vector<2x24x192xf32> to vector<48x192xf32>
    %8 = arith.truncf %7 : vector<48x192xf32> to vector<48x192xbf16>
    %c0_13 = arith.constant 0 : index
    %c0_14 = arith.constant 0 : index
    %9 = vector.load %arg4[%c0_13, %c0_14] : memref<192x192xbf16, #tpu.memory_space<vmem>>, vector<192x192xbf16>
    %cst = arith.constant dense<0.000000e+00> : vector<48x192xf32>
    %10 = tpu.matmul %8, %9, %cst {dimension_numbers = #tpu.dot_dimension_numbers<[1], [0], [0], [1], [0, 0, 1, 1], [], []>} : vector<48x192xbf16>, vector<192x192xbf16>, vector<48x192xf32> -> vector<48x192xf32>
    %11 = vector.shape_cast %10 : vector<48x192xf32> to vector<2x1x24x192xf32>
    %c0_15 = arith.constant 0 : index
    %c0_16 = arith.constant 0 : index
    %c0_17 = arith.constant 0 : index
    %12 = vector.load %arg3[%c0_15, %c0_16, %c0_17] : memref<2x4x192xf32, #tpu.memory_space<vmem>>, vector<2x4x192xf32>
    %13 = vector.shape_cast %12 : vector<2x4x192xf32> to vector<2x4x1x192xf32>
    %14 = vector.broadcast %11 : vector<2x1x24x192xf32> to vector<2x4x24x192xf32>
    %15 = vector.broadcast %13 : vector<2x4x1x192xf32> to vector<2x4x24x192xf32>
    %16 = arith.addf %14, %15 : vector<2x4x24x192xf32>
    %cst_18 = arith.constant 0.000000e+00 : f32
    %17 = vector.broadcast %cst_18 : f32 to vector<2x4x24x192xf32>
    %18 = arith.maximumf %16, %17 : vector<2x4x24x192xf32>
    %19 = vector.shape_cast %18 : vector<2x4x24x192xf32> to vector<192x192xf32>
    %20 = arith.truncf %19 : vector<192x192xf32> to vector<192x192xbf16>
    %cst_19 = arith.constant dense<0.000000e+00> : vector<192x96xf32>
    %21 = tpu.matmul %20, %0, %cst_19 {dimension_numbers = #tpu.dot_dimension_numbers<[1], [0], [0], [1], [0, 0, 1, 1], [], []>} : vector<192x192xbf16>, vector<192x96xbf16>, vector<192x96xf32> -> vector<192x96xf32>
    %22 = vector.broadcast %1 : vector<1x96xf32> to vector<192x96xf32>
    %23 = arith.addf %21, %22 : vector<192x96xf32>
    %cst_20 = arith.constant 0.000000e+00 : f32
    %24 = vector.broadcast %cst_20 : f32 to vector<192x96xf32>
    %25 = arith.maximumf %23, %24 : vector<192x96xf32>
    %26 = arith.truncf %25 : vector<192x96xf32> to vector<192x96xbf16>
    %cst_21 = arith.constant dense<0.000000e+00> : vector<192x48xf32>
    %27 = tpu.matmul %26, %2, %cst_21 {dimension_numbers = #tpu.dot_dimension_numbers<[1], [0], [0], [1], [0, 0, 1, 1], [], []>} : vector<192x96xbf16>, vector<96x48xbf16>, vector<192x48xf32> -> vector<192x48xf32>
    %28 = vector.broadcast %3 : vector<1x48xf32> to vector<192x48xf32>
    %29 = arith.addf %27, %28 : vector<192x48xf32>
    %cst_22 = arith.constant 0.000000e+00 : f32
    %30 = vector.broadcast %cst_22 : f32 to vector<192x48xf32>
    %31 = arith.maximumf %29, %30 : vector<192x48xf32>
    %32 = arith.truncf %31 : vector<192x48xf32> to vector<192x48xbf16>
    %cst_23 = arith.constant dense<0.000000e+00> : vector<8x192xf32>
    %33 = tpu.matmul %4, %32, %cst_23 {dimension_numbers = #tpu.dot_dimension_numbers<[1], [1], [0], [0], [0, 0, 1, 0], [], []>} : vector<8x48xbf16>, vector<192x48xbf16>, vector<8x192xf32> -> vector<8x192xf32>
    %34 = vector.extract_strided_slice %33 {offsets = [0, 0], sizes = [1, 192], strides = [1, 1]} : vector<8x192xf32> to vector<1x192xf32>
    %35 = vector.broadcast %5 : f32 to vector<1x192xf32>
    %36 = arith.addf %34, %35 : vector<1x192xf32>
    %37 = arith.negf %36 : vector<1x192xf32>
    %38 = math.exp %37 : vector<1x192xf32>
    %cst_24 = arith.constant 1.000000e+00 : f32
    %39 = vector.broadcast %cst_24 : f32 to vector<1x192xf32>
    %40 = arith.addf %39, %38 : vector<1x192xf32>
    %41 = arith.divf %39, %40 : vector<1x192xf32>
    %42 = vector.extract_strided_slice %41 {offsets = [0, 0], sizes = [1, 24], strides = [1, 1]} : vector<1x192xf32> to vector<1x24xf32>
    %c0_25 = arith.constant 0 : index
    %c0_26 = arith.constant 0 : index
    %c0_27 = arith.constant 0 : index
    %43 = vector.load %arg11[%c0_25, %c0_26, %c0_27] : memref<2x4x24xf32, #tpu.memory_space<vmem>>, vector<1x1x24xf32>
    %44 = vector.shape_cast %43 : vector<1x1x24xf32> to vector<1x24xf32>
    %45 = vector.shape_cast %42 : vector<1x24xf32> to vector<1x1x24xf32>
    tpu.vector_store %arg11[%c0_25, %c0_26, %c0_27], %45 {strides = array<i32>} : memref<2x4x24xf32, #tpu.memory_space<vmem>>, vector<1x1x24xf32>,
    %46 = vector.extract_strided_slice %41 {offsets = [0, 24], sizes = [1, 24], strides = [1, 1]} : vector<1x192xf32> to vector<1x24xf32>
    %c0_28 = arith.constant 0 : index
    %c1 = arith.constant 1 : index
    %c0_29 = arith.constant 0 : index
    %47 = vector.load %arg11[%c0_28, %c1, %c0_29] : memref<2x4x24xf32, #tpu.memory_space<vmem>>, vector<1x1x24xf32>
    %48 = vector.shape_cast %47 : vector<1x1x24xf32> to vector<1x24xf32>
    %49 = vector.shape_cast %46 : vector<1x24xf32> to vector<1x1x24xf32>
    tpu.vector_store %arg11[%c0_28, %c1, %c0_29], %49 {strides = array<i32>} : memref<2x4x24xf32, #tpu.memory_space<vmem>>, vector<1x1x24xf32>,
    %50 = vector.extract_strided_slice %41 {offsets = [0, 48], sizes = [1, 24], strides = [1, 1]} : vector<1x192xf32> to vector<1x24xf32>
    %c0_30 = arith.constant 0 : index
    %c2 = arith.constant 2 : index
    %c0_31 = arith.constant 0 : index
    %51 = vector.load %arg11[%c0_30, %c2, %c0_31] : memref<2x4x24xf32, #tpu.memory_space<vmem>>, vector<1x1x24xf32>
    %52 = vector.shape_cast %51 : vector<1x1x24xf32> to vector<1x24xf32>
    %53 = vector.shape_cast %50 : vector<1x24xf32> to vector<1x1x24xf32>
    tpu.vector_store %arg11[%c0_30, %c2, %c0_31], %53 {strides = array<i32>} : memref<2x4x24xf32, #tpu.memory_space<vmem>>, vector<1x1x24xf32>,
    %54 = vector.extract_strided_slice %41 {offsets = [0, 72], sizes = [1, 24], strides = [1, 1]} : vector<1x192xf32> to vector<1x24xf32>
    %c0_32 = arith.constant 0 : index
    %c3 = arith.constant 3 : index
    %c0_33 = arith.constant 0 : index
    %55 = vector.load %arg11[%c0_32, %c3, %c0_33] : memref<2x4x24xf32, #tpu.memory_space<vmem>>, vector<1x1x24xf32>
    %56 = vector.shape_cast %55 : vector<1x1x24xf32> to vector<1x24xf32>
    %57 = vector.shape_cast %54 : vector<1x24xf32> to vector<1x1x24xf32>
    tpu.vector_store %arg11[%c0_32, %c3, %c0_33], %57 {strides = array<i32>} : memref<2x4x24xf32, #tpu.memory_space<vmem>>, vector<1x1x24xf32>,
    %58 = vector.extract_strided_slice %41 {offsets = [0, 96], sizes = [1, 24], strides = [1, 1]} : vector<1x192xf32> to vector<1x24xf32>
    %c1_34 = arith.constant 1 : index
    %c0_35 = arith.constant 0 : index
    %c0_36 = arith.constant 0 : index
    %59 = vector.load %arg11[%c1_34, %c0_35, %c0_36] : memref<2x4x24xf32, #tpu.memory_space<vmem>>, vector<1x1x24xf32>
    %60 = vector.shape_cast %59 : vector<1x1x24xf32> to vector<1x24xf32>
    %61 = vector.shape_cast %58 : vector<1x24xf32> to vector<1x1x24xf32>
    tpu.vector_store %arg11[%c1_34, %c0_35, %c0_36], %61 {strides = array<i32>} : memref<2x4x24xf32, #tpu.memory_space<vmem>>, vector<1x1x24xf32>,
    %62 = vector.extract_strided_slice %41 {offsets = [0, 120], sizes = [1, 24], strides = [1, 1]} : vector<1x192xf32> to vector<1x24xf32>
    %c1_37 = arith.constant 1 : index
    %c1_38 = arith.constant 1 : index
    %c0_39 = arith.constant 0 : index
    %63 = vector.load %arg11[%c1_37, %c1_38, %c0_39] : memref<2x4x24xf32, #tpu.memory_space<vmem>>, vector<1x1x24xf32>
    %64 = vector.shape_cast %63 : vector<1x1x24xf32> to vector<1x24xf32>
    %65 = vector.shape_cast %62 : vector<1x24xf32> to vector<1x1x24xf32>
    tpu.vector_store %arg11[%c1_37, %c1_38, %c0_39], %65 {strides = array<i32>} : memref<2x4x24xf32, #tpu.memory_space<vmem>>, vector<1x1x24xf32>,
    %66 = vector.extract_strided_slice %41 {offsets = [0, 144], sizes = [1, 24], strides = [1, 1]} : vector<1x192xf32> to vector<1x24xf32>
    %c1_40 = arith.constant 1 : index
    %c2_41 = arith.constant 2 : index
    %c0_42 = arith.constant 0 : index
    %67 = vector.load %arg11[%c1_40, %c2_41, %c0_42] : memref<2x4x24xf32, #tpu.memory_space<vmem>>, vector<1x1x24xf32>
    %68 = vector.shape_cast %67 : vector<1x1x24xf32> to vector<1x24xf32>
    %69 = vector.shape_cast %66 : vector<1x24xf32> to vector<1x1x24xf32>
    tpu.vector_store %arg11[%c1_40, %c2_41, %c0_42], %69 {strides = array<i32>} : memref<2x4x24xf32, #tpu.memory_space<vmem>>, vector<1x1x24xf32>,
    %70 = vector.extract_strided_slice %41 {offsets = [0, 168], sizes = [1, 24], strides = [1, 1]} : vector<1x192xf32> to vector<1x24xf32>
    %c1_43 = arith.constant 1 : index
    %c3_44 = arith.constant 3 : index
    %c0_45 = arith.constant 0 : index
    %71 = vector.load %arg11[%c1_43, %c3_44, %c0_45] : memref<2x4x24xf32, #tpu.memory_space<vmem>>, vector<1x1x24xf32>
    %72 = vector.shape_cast %71 : vector<1x1x24xf32> to vector<1x24xf32>
    %73 = vector.shape_cast %70 : vector<1x24xf32> to vector<1x1x24xf32>
    tpu.vector_store %arg11[%c1_43, %c3_44, %c0_45], %73 {strides = array<i32>} : memref<2x4x24xf32, #tpu.memory_space<vmem>>, vector<1x1x24xf32>,
    return
  }
  func.func @transform_0(%arg0: i32, %arg1: i32) -> (i32, i32, i32) {
    %c0_i32 = arith.constant 0 : i32
    %c0_i32_0 = arith.constant 0 : i32
    return %arg0, %arg1, %c0_i32 : i32, i32, i32
  }
  func.func @transform_1(%arg0: i32, %arg1: i32) -> (i32, i32, i32) {
    %c0_i32 = arith.constant 0 : i32
    %c0_i32_0 = arith.constant 0 : i32
    %c0_i32_1 = arith.constant 0 : i32
    return %arg0, %c0_i32, %c0_i32_0 : i32, i32, i32
  }
  func.func @transform_2(%arg0: i32, %arg1: i32) -> (i32, i32) {
    %c0_i32 = arith.constant 0 : i32
    %c0_i32_0 = arith.constant 0 : i32
    %c0_i32_1 = arith.constant 0 : i32
    return %c0_i32, %c0_i32_0 : i32, i32
  }
  func.func @transform_3(%arg0: i32, %arg1: i32) -> (i32, i32) {
    %c0_i32 = arith.constant 0 : i32
    %c0_i32_0 = arith.constant 0 : i32
    %c0_i32_1 = arith.constant 0 : i32
    return %c0_i32, %c0_i32_0 : i32, i32
  }
  func.func @transform_4(%arg0: i32, %arg1: i32) -> (i32, i32) {
    %c0_i32 = arith.constant 0 : i32
    %c0_i32_0 = arith.constant 0 : i32
    %c0_i32_1 = arith.constant 0 : i32
    return %c0_i32, %c0_i32_0 : i32, i32
  }
  func.func @transform_5(%arg0: i32, %arg1: i32) -> (i32, i32) {
    %c0_i32 = arith.constant 0 : i32
    %c0_i32_0 = arith.constant 0 : i32
    %c0_i32_1 = arith.constant 0 : i32
    return %c0_i32, %c0_i32_0 : i32, i32
  }
  func.func @transform_6(%arg0: i32, %arg1: i32) -> (i32, i32) {
    %c0_i32 = arith.constant 0 : i32
    %c0_i32_0 = arith.constant 0 : i32
    %c0_i32_1 = arith.constant 0 : i32
    return %c0_i32, %c0_i32_0 : i32, i32
  }
  func.func @transform_7(%arg0: i32, %arg1: i32) -> (i32, i32) {
    %c0_i32 = arith.constant 0 : i32
    %c0_i32_0 = arith.constant 0 : i32
    %c0_i32_1 = arith.constant 0 : i32
    return %c0_i32, %c0_i32_0 : i32, i32
  }
  func.func @transform_8(%arg0: i32, %arg1: i32) -> i32 {
    %c0_i32 = arith.constant 0 : i32
    %c0_i32_0 = arith.constant 0 : i32
    return %c0_i32 : i32
  }
  func.func @transform_9(%arg0: i32, %arg1: i32) -> (i32, i32, i32) {
    %c0_i32 = arith.constant 0 : i32
    %c0_i32_0 = arith.constant 0 : i32
    return %arg0, %c0_i32, %arg1 : i32, i32, i32
  }
}

</mosaic_0001>

<bundles_post_ra>
// kernel: tpu_custom_call.1
= control target key start
LH: loop header
LB: loop body
LE: loop exit
PB: predicated region body
PF: predicated region fallthrough
CT: control target
= control target key end

     0   :  { %s2914_s0 = inlined_call_operand.hbm [shape: f32[3,24,192], index: 0, kind: input, shape index: {}]   ;;  %s2915_s1 = inlined_call_operand.vmem [shape: f32[3,4,192], index: 1, kind: input, shape index: {}]   ;;  %s2916_s2 = inlined_call_operand.hbm [shape: bf16[192,192], index: 2, kind: input, shape index: {}]   ;;  %s2917_s3 = inlined_call_operand.hbm [shape: bf16[192,96], index: 3, kind: input, shape index: {}]   ;;  %s2918_s4 = inlined_call_operand.vmem [shape: f32[1,96], index: 4, kind: input, shape index: {}]   ;;  %s2919_s5 = inlined_call_operand.vmem [shape: bf16[96,48], index: 5, kind: input, shape index: {}]   ;;  %s2920_s6 = inlined_call_operand.vmem [shape: f32[1,48], index: 6, kind: input, shape index: {}]   ;;  %s2921_s7 = inlined_call_operand.vmem [shape: bf16[8,48], index: 7, kind: input, shape index: {}]   ;;  %s2922_s8 = inlined_call_operand.<no memory space> [shape: f32[1], index: 8, kind: input, shape index: {}]   ;;  %s2923_s9 = inlined_call_operand.hbm [shape: f32[3,4,24], index: 9, kind: output, shape index: {}]  }
   0x1   :  { %2933 = sst [smem:[#allocation18_spill]] %s2923_s9 }
   0x2   :  { %14 = sst [smem:[#allocation2]] %s2922_s8 }
   0x3   :  { %15 = vsyncpa [#allocation4], 0 }
   0x4   :  { %17 = vsyncpa [#allocation4 + $0x1], 0 }
   0x5   :  { %18 = vsyncpa [#allocation7], 0 }
   0x6   :  { %19 = vsyncpa [#allocation5], 0 }
   0x7   :  { %21 = vsyncpa [#allocation5 + $0x1], 0  ;;  %s2366_s11 = smov 0   ;;  %s2368_s12 = smov 0  }
   0x8   :  { %s2370_s13 = smov 0   ;;  %s2372_s14 = smov 0  }
   0x9   :  { %s2374_s15 = smov 0   ;;  %s2376_s16 = smov 0  }
   0xa LB: > { %2934 = sst [smem:[#allocation13_spill]] %s2270_s11  ;;  %s1795_s8 = sadd.s32 4294967295, %s2290_s16   ;;  %s2290_s16 = sphi %s2376_s16, %s27_s16   ;;  %s2286_s15 = sphi %s2374_s15, %s2962_s15   ;;  %s2282_s14 = sphi %s2372_s14, %s2961_s14   ;;  %s2278_s13 = sphi %s2370_s13, %s2960_s13   ;;  %s2274_s12 = sphi %s2368_s12, %s2959_s12   ;;  %s2270_s11 = sphi %s2366_s11, %s2958_s11  }
   0xb   : > { %s1796_s17 = sadd.s32 4294967294, %s2290_s16   ;;  %s39_s18 = sadd.s32 1, %s2286_s15 }
   0xc   : > { %s48_s19 = sadd.s32 1, %s2278_s13  ;;  %p41_p0 = scmp.ge.s32.totalorder %s39_s18, 2 }
   0xd   : > { %p55_p1 = scmp.ne.s32.totalorder %s2278_s13, %s2274_s12  ;;  %p56_p2 = scmp.eq.s32.totalorder %s2290_s16, 0 }
   0xe   : > { %p61_p3 = scmp.ne.s32.totalorder %s2274_s12, %s2270_s11  ;;  %s2964_s18 = smov (%p41_p0, %s39_s18), 0 }
   0xf   : > { %2935 = sst [smem:[#allocation14_spill]] %s2964_s18  ;;  %p2407_p4 = por %p56_p2, %p55_p1 }
  0x10   : > { %p2411_p5 = scmp.eq.s32.totalorder %s1795_s8, 0  ;;  %s43_s22 = ssub.s32 %s2286_s15, %s2964_s18 }
  0x11   : > { %s2936_s20 = scalar_select %p2407_p4, 1, 0 }
  0x12   : > { %s2937_s21 = scalar_select %p2411_p5, 1, 0 }
  0x13   : > { %p260_p6 = scmp.eq.s32.totalorder %s1795_s8, 1  ;;  %p46_p7 = scmp.eq.s32.totalorder %s43_s22, 0 }
  0x14   : > { %p2419_p8 = por %p2411_p5, %p61_p3  ;;  %p266_p10 = scmp.eq.s32.totalorder %s1796_s17, 1 }
  0x15   : > { %p2423_p9 = por %p260_p6, %p55_p1  ;;  %p1797_p12 = scmp.ge.s32.totalorder %s2290_s16, 1 }
  0x16   : > { %s2938_s23 = scalar_select %p2419_p8, 1, 0 }
  0x17   : > { %s2939_s24 = scalar_select %p2423_p9, 1, 0 }
  0x18   : > { %s2428_s25 = scalar_select %p46_p7, %s2278_s13, %s48_s19  }
  0x19   : > { %2940 = sst [smem:[#allocation15_spill]] %s2939_s24  ;;  %p2430_p11 = por %p266_p10, %p61_p3 }
  0x1a   : > { %2941 = sst [smem:[#allocation16_spill]] %s2428_s25  ;;  %p273_p13 = scmp.lt.s32.totalorder %s2290_s16, 3 }
  0x1b   : > { %s2942_s26 = scalar_select %p2430_p11, 1, 0 }
  0x1c   : > { %p2436_p0 = pnand %p1797_p12, %p273_p13  ;;  %s2292_s28 = smov [#allocation6]  }
  0x1d   : > { %2943 = sst [smem:[#allocation17_spill]] %s2942_s26  ;;  %s285_s29 = sshll.u32 %s2292_s28, 4  ;;  %s286_s29 = int_to_ptr.vmem [resolvable:$true] %s285_s29 }
  0x1e   : > { %s2944_s27 = scalar_select %p2436_p0, 1, 0 }
  0x1f   : > { %p1975_p1 = pneg %p2436_p0  ;;  %s2293_s30 = smov [#allocation8]  }
  0x20   : > { %s298_s10 = sshll.u32 %s2293_s30, 4  ;;  %s2120_s22 = scalar_lea.hbm %s2916_s2, 3072  ;;  %s2448_s10 = int_to_ptr.vmem [resolvable:$true] %s298_s10 }
  0x21   : > { %p2444_p2 = pnand %p1975_p1, %p2411_p5  ;;  %p2121_p3 = scmp.ne.s32.totalorder %s2916_s2, %s2120_s22 }
  0x22   : > { %p2127_p12 = scmp.lt.u32.totalorder %s2120_s22, %s2916_s2 }
  0x23   : > { %p2122_p6 = pneg %p2444_p2 }
  0x25   : > { %p2123_p7 = pnand %p2122_p6, %p2121_p3 }
  0x27   : > { %p2124_p10 = pneg %p2123_p7 }
  0x29   : > { %p2129_p13 = pnand %p2127_p12, %p2124_p10 }
  0x2b   : > { %2132 = shalt.err (!%p2129_p13)
}
  0x2c   : > { %s2133_s26 = scalar_lea.vmem %s286_s29, 3072  ;;  %p2141_p5 = scmp.lt.s32.totalorder %s286_s29, %s286_s29 }
  0x2d   : > { %p2134_p1 = scmp.ne.s32.totalorder %s286_s29, %s2133_s26  ;;  %p2142_p8 = scmp.lt.s32.totalorder %s2133_s26, %s2133_s26 }
  0x2f   : > { %p2136_p11 = pnand %p2134_p1, %p2122_p6  ;;  %p2143_p0 = por %p2142_p8, %p2141_p5 }
  0x31   : > { %p2137_p9 = pneg %p2136_p11 }
  0x33   : > { %p2144_p4 = pnand %p2143_p0, %p2137_p9 }
  0x35   : > { %2147 = shalt.err (!%p2144_p4)
}
  0x36   : > { %s2294_s18 = smov 128   ;;  %s2295_s17 = smov 8  }
  0x37   : > { %1978 = dma.hbm_to_vmem [thread:$0]  (!%p2444_p2), %s2916_s2, 3072, %s286_s29, [#allocation7], %s2294_s18, %s2294_s18, %s2295_s17  }
  0x38   : > { %s2148_s30 = scalar_lea.hbm %s2917_s3, 1536 }
  0x39   : > { %p2149_p11 = scmp.ne.s32.totalorder %s2917_s3, %s2148_s30  ;;  %p2155_p8 = scmp.lt.u32.totalorder %s2148_s30, %s2917_s3 }
  0x3b   : > { %p2151_p4 = pnand %p2149_p11, %p2122_p6 }
  0x3d   : > { %p2152_p5 = pneg %p2151_p4 }
  0x3f   : > { %p2157_p9 = pnand %p2155_p8, %p2152_p5 }
  0x41   : > { %2160 = shalt.err (!%p2157_p9)
}
  0x42   : > { %s2161_s29 = scalar_lea.vmem %s2448_s10, 1536  ;;  %p2169_p10 = scmp.lt.s32.totalorder %s2448_s10, %s2448_s10 }
  0x43   : > { %p2162_p0 = scmp.ne.s32.totalorder %s2448_s10, %s2161_s29  ;;  %p2170_p12 = scmp.lt.s32.totalorder %s2161_s29, %s2161_s29 }
  0x45   : > { %p2164_p3 = pnand %p2162_p0, %p2122_p6  ;;  %p2171_p13 = por %p2170_p12, %p2169_p10 }
  0x47   : > { %p2165_p7 = pneg %p2164_p3 }
  0x49   : > { %p2172_p1 = pnand %p2171_p13, %p2165_p7 }
  0x4b   : > { %2175 = shalt.err (!%p2172_p1)
}
  0x4c   : > { %s2296_s9 = smov 64   ;;  %s2297_s11 = smov 4  }
  0x4d   : > { %1981 = dma.hbm_to_vmem [thread:$0]  (!%p2444_p2), %s2917_s3, 1536, %s2448_s10, [#allocation7], %s2296_s9, %s2296_s9, %s2297_s11  }
  0x4e   : > { %p1800_p11 = scmp.ge.s32.totalorder %s2290_s16, 2 }
  0x4f   : > { %p2946_p6 = scmp.ne.s32.totalorder (!%p1800_p11), %s2936_s20, 0 }
  0x50   : > { %323 = sbr.rel (%p1800_p11) target bundleno = 123 (0x7b), region = 44 }
  0x57   : > { %326 = sbr.rel (!%p2946_p6) target bundleno = 123 (0x7b), region = 48  ;;  %s327_s17 = sand.u32 (%p2946_p6), 1, %s2278_s13  }
  0x58   : > { %s1801_s25 = sshll.u32 (%p2946_p6), %s2286_s15, 1  ;;  %s1962_s19 = smul.u32 (%p2946_p6), 96, %s327_s17 }
  0x59   : > { %s334_s22 = ssub.s32 (%p2946_p6), 3, %s1801_s25  ;;  %s2507_s28 = scalar_lea.sflag (%p2946_p6), [#allocation4], %s327_s17 }
  0x5a   : > { %p335_p4 = scmp.lt.s32.totalorder (%p2946_p6), %s334_s22, 2  ;;  %s331_s30 = scalar_lea.vmem (%p2946_p6), [#allocation3], %s1962_s19 }
  0x5e   : > { %s2966_s22 = smov (!%p335_p4, %s334_s22), 2 }
  0x5f   : > { %s2504_s8 = smul.u32 768, %s2966_s22 }
  0x61   : > { %s341_s10 = ssub.s32 1536, %s2504_s8 }
  0x62   : > { %342 = vsyncadd %s2507_s28, %s341_s10  ;;  %p1805_p2 = scmp.ne.s32.totalorder %s2504_s8, 0  ;;  %s1963_s20 = smul.u32 1536, %s2286_s15 }
  0x63   : > { %s351_s26 = sshll.u32 %s331_s30, 4  ;;  %s2180_s25 = scalar_lea.hbm %s2914_s0, 2304  ;;  %s2517_s26 = int_to_ptr.vmem [resolvable:$true] %s351_s26 }
  0x64   : > { %s2515_s11 = scalar_lea.hbm %s2914_s0, %s1963_s20 }
  0x65   : > { %s2176_s24 = scalar_lea.hbm %s2515_s11, %s2504_s8  ;;  %p2181_p0 = scmp.lt.u32.totalorder %s2515_s11, %s2914_s0 }
  0x66   : > { %p2177_p5 = scmp.ne.s32.totalorder %s2515_s11, %s2176_s24  ;;  %p2182_p3 = scmp.lt.u32.totalorder %s2180_s25, %s2176_s24 }
  0x67   : > { %p2184_p10 = scmp.lt.u32.totalorder %s2176_s24, %s2515_s11 }
  0x68   : > { %p2178_p8 = pnand %p2177_p5, %p1805_p2  ;;  %p2183_p7 = por %p2182_p3, %p2181_p0 }
  0x6a   : > { %p2179_p9 = pneg %p2178_p8  ;;  %p2185_p12 = por %p2184_p10, %p2183_p7 }
  0x6c   : > { %p2186_p13 = pnand %p2185_p12, %p2179_p9 }
  0x6e   : > { %2189 = shalt.err (!%p2186_p13)
}
  0x6f   : > { %s2190_s10 = scalar_lea.vmem %s2517_s26, %s2504_s8  ;;  %s2298_s30 = smov [#allocation3]  }
  0x70   : > { %p2191_p1 = scmp.ne.s32.totalorder %s2517_s26, %s2190_s10  ;;  %s2194_s20 = sshll.u32 %s2298_s30, 4  ;;  %s2195_s20 = int_to_ptr.vmem [resolvable:$false] %s2194_s20 }
  0x71   : > { %s2196_s29 = scalar_lea.vmem %s2195_s20, 3072  ;;  %p2197_p5 = scmp.lt.s32.totalorder %s2517_s26, %s2195_s20 }
  0x72   : > { %p2192_p6 = pnand %p2191_p1, %p1805_p2  ;;  %p2198_p8 = scmp.lt.s32.totalorder %s2196_s29, %s2190_s10 }
  0x74   : > { %p2193_p4 = pneg %p2192_p6  ;;  %p2199_p0 = por %p2198_p8, %p2197_p5 }
  0x76   : > { %p2200_p3 = pnand %p2199_p0, %p2193_p4 }
  0x78   : > { %2203 = shalt.err (!%p2200_p3)
}
  0x79   : > { %s2299_s9 = smov 256   ;;  %s2300_s24 = smov 16  }
  0x7a   : > { %357 = dma.hbm_to_vmem [thread:$0]  (%p1805_p2), %s2515_s11, %s2504_s8, %s2517_s26, %s2507_s28, %s2299_s9, %s2299_s9, %s2300_s24  }
  0x7b PF: > { %p2947_p9 = scmp.ne.s32.totalorder %s2944_s27, 0 }
  0x7c   : > { %s2547_s18 = sand.u32 (!%p2947_p9), 1, %s2274_s12   ;;  %p2948_p7 = scmp.ne.s32.totalorder (!%p2947_p9), %s2938_s23, 0 }
  0x7d   : > { %383 = sbr.rel (%p2947_p9) target bundleno = 1354 (0x54a), region = 56  ;;  %s386_s25 = scalar_lea.sflag (!%p2947_p9), [#allocation4], %s2547_s18 }
  0x7e   : > { %s1964_s17 = smul.u32 (!%p2947_p9), 96, %s2547_s18 }
  0x80   : > { %s2551_s19 = scalar_lea.vmem (!%p2947_p9), [#allocation3], %s1964_s17 }
  0x84   : > { %2257 = dma.done.wait (%p2948_p7), %s386_s25, 1536  }
  0x85   : > { %2259 = vsyncadd (%p2948_p7), %s386_s25, 4294965760  ;;  %p2949_p2 = scmp.ne.s32.totalorder %s2937_s21, 0 }
  0x87   : > { %2261 = dma.done.wait (%p2949_p2), [#allocation7], 4608  }
  0x88   : > { %2263 = vsyncadd (%p2949_p2), [#allocation7], 4294962688  ;;  %v2301_v0 = vmov 0   ;;  %v2058_v1 = vld [vmem:[#allocation6 + $0x4] ss:$8 sps:$4 sm:$0xff]   ;;  %v517_v13 = vld [vmem:[%s2551_s19 + $0x18] sm:$0xff]  ;;  %v764_v59 = vlaneseq }
  0x89   : > { %1115 = vmatprep.subr.bf16.mxu1 %v2301_v0  ;;  %v2060_v2 = vld [vmem:[#allocation6] ss:$8 sps:$4 sm:$0xff]   ;;  %686 = vmatprep.subr.bf16.mxu0 %v2058_v1  ;;  %v2061_v3 = vld [vmem:[#allocation6 + $0x14] ss:$8 sps:$4 sm:$0xff]   ;;  %v2063_v4 = vld [vmem:[#allocation6 + $0x10] ss:$8 sps:$4 sm:$0xff]  }
  0x8a   : > { %687 = vmatpush1.bf16.msra.mxu0 %v2060_v2  ;;  %v2064_v5 = vld [vmem:[#allocation6 + $0x24] ss:$8 sps:$4 sm:$0xff]   ;;  %v2066_v6 = vld [vmem:[#allocation6 + $0x20] ss:$8 sps:$4 sm:$0xff]   ;;  %v2067_v7 = vld [vmem:[#allocation6 + $0x34] ss:$8 sps:$4 sm:$0xff]  }
  0x8b   : > { %688 = vmatprep.subr.bf16.mxu0 %v2061_v3  ;;  %v2069_v8 = vld [vmem:[#allocation6 + $0x30] ss:$8 sps:$4 sm:$0xff]   ;;  %v2070_v9 = vld [vmem:[#allocation6 + $0x44] ss:$8 sps:$4 sm:$0xff]   ;;  %v2072_v10 = vld [vmem:[#allocation6 + $0x40] ss:$8 sps:$4 sm:$0xff]  }
  0x8c   : > { %v2073_v11 = vld [vmem:[#allocation6 + $0x54] ss:$8 sps:$4 sm:$0xff]   ;;  %v515_v12 = vld [vmem:[%s2551_s19 + $0x8] sm:$0xff]  ;;  %vm676_vm0 = vcmask 523264   ;;  %v2075_v15 = vld [vmem:[#allocation6 + $0x50] ss:$8 sps:$4 sm:$0xff]  }
  0x8d   : > { %v527_v14 = vpack.c.bf16 %v517_v13, %v515_v12  ;;  %v2076_v16 = vld [vmem:[#allocation6 + $0x64] ss:$8 sps:$4 sm:$0xff]   ;;  %v2078_v19 = vld [vmem:[#allocation6 + $0x60] ss:$8 sps:$4 sm:$0xff]   ;;  %v2079_v20 = vld [vmem:[#allocation6 + $0x74] ss:$8 sps:$4 sm:$0xff]  }
  0x8e   : > { %689 = vmatpush1.bf16.msra.mxu0 %v2063_v4  ;;  %v2094_v17 = vld [vmem:[#allocation8] sm:$0xff]   ;;  %v2095_v18 = vld [vmem:[#allocation8 + $0x8] sm:$0xff]   ;;  %v2081_v21 = vld [vmem:[#allocation6 + $0x70] ss:$8 sps:$4 sm:$0xff]   ;;  %s2590_s21 = sshll.u32 %s2282_s14, 1  ;;  %v765_v61 = vshrl.u32 %v764_v59, 7 }
  0x8f   : > { %690 = vmatprep.subr.bf16.mxu0 %v2064_v5  ;;  %1841 = vmatprep.mubr.msk.bf16.mxu0 %vm676_vm0, %v527_v14  ;;  %v2096_v22 = vld [vmem:[#allocation8 + $0x10] sm:$0xff]   ;;  %v2082_v23 = vld [vmem:[#allocation6 + $0x84] ss:$8 sps:$4 sm:$0xff]   ;;  %v2097_v24 = vld [vmem:[#allocation8 + $0x18] sm:$0xff]   ;;  %p457_p10 = scmp.lt.s32.totalorder %s2590_s21, 2  ;;  %vm1322_vm1 = vcmask 785408  }
  0x90   : > { %1116 = vmatpush1.bf16.msra.mxu1 %v2094_v17  ;;  %v2084_v25 = vld [vmem:[#allocation6 + $0x80] ss:$8 sps:$4 sm:$0xff]   ;;  %v2085_v26 = vld [vmem:[#allocation6 + $0x94] ss:$8 sps:$4 sm:$0xff]   ;;  %v2087_v28 = vld [vmem:[#allocation6 + $0x90] ss:$8 sps:$4 sm:$0xff]  }
  0x91   : > { %1117 = vmatprep.subr.bf16.mxu1 %v2301_v0  ;;  %v2098_v27 = vld [vmem:[#allocation8 + $0x20] sm:$0xff]   ;;  %v2099_v30 = vld [vmem:[#allocation8 + $0x28] sm:$0xff]   ;;  %v2091_v32 = vld [vmem:[#allocation6 + $0xb4] ss:$8 sps:$4 sm:$0xff]   ;;  %s458_s23 = scalar_select %p457_p10, %s2590_s21, 2  ;;  %vm1524_vm2 = vcmask 392192  }
  0x92   : > { %691 = vmatpush1.bf16.msra.mxu0 %v2066_v6  ;;  %v2088_v29 = vld [vmem:[#allocation6 + $0xa4] ss:$8 sps:$4 sm:$0xff]   ;;  %v2090_v31 = vld [vmem:[#allocation6 + $0xa0] ss:$8 sps:$4 sm:$0xff]   ;;  %v2100_v33 = vld [vmem:[#allocation8 + $0x30] sm:$0xff]   ;;  %s513_s10 = sld [smem:[#allocation2]] }
  0x93   : > { %692 = vmatprep.subr.bf16.mxu0 %v2067_v7  ;;  %v2093_v34 = vld [vmem:[#allocation6 + $0xb0] ss:$8 sps:$4 sm:$0xff]   ;;  %v514_v35 = vld [vmem:[%s2551_s19] sm:$0xff]  ;;  %v519_v37 = vld [vmem:[%s2551_s19 + $0x28] sm:$0xff]  ;;  %s1906_s27 = sshll.u32 %s458_s23, 3  ;;  %vm1620_vm3 = vcmask 188416  }
  0x94   : > { %1118 = vmatpush1.bf16.msra.mxu1 %v2095_v18  ;;  %v516_v36 = vld [vmem:[%s2551_s19 + $0x10] sm:$0xff]  ;;  %v521_v38 = vld [vmem:[%s2551_s19 + $0x38] sm:$0xff]  ;;  %v2102_v42 = vld [vmem:[#allocation8 + $0x40] sm:$0xff]   ;;  %v2302_v57 = vmov 1966171168   ;;  %s461_s30 = scalar_lea.vmem %s2915_s1, %s1906_s27  ;;  %s2303_s20 = smov 104  }
  0x95   : > { %1119 = vmatprep.subr.bf16.mxu1 %v2301_v0  ;;  %v526_v39 = vpack.c.bf16 %v516_v36, %v514_v35  ;;  %v2101_v40 = vld [vmem:[#allocation8 + $0x38] sm:$0xff]   ;;  %v529_v41 = vpack.c.bf16 %v521_v38, %v519_v37  ;;  %v518_v43 = vld [vmem:[%s2551_s19 + $0x20] sm:$0xff]  ;;  %v520_v44 = vld [vmem:[%s2551_s19 + $0x30] sm:$0xff]  ;;  %v762_v58 = vunpack.c.l.s4 %v2302_v57  ;;  %s2304_s29 = smov 8   ;;  %s2305_s24 = smov 80   ;;  %vm1645_vm4 = vcmask 64512  }
  0x96   : > { %693 = vmatpush1.bf16.msra.mxu0 %v2069_v8  ;;  %v523_v45 = vld [vmem:[%s2551_s19 + $0x48] sm:$0xff]  ;;  %v525_v46 = vld [vmem:[%s2551_s19 + $0x58] sm:$0xff]  ;;  %v528_v47 = vpack.c.bf16 %v520_v44, %v518_v43  ;;  %v522_v49 = vld [vmem:[%s2551_s19 + $0x40] sm:$0xff]  ;;  %s2306_s17 = smov 56   ;;  %s2307_s25 = smov 32  }
  0x97   : > { %694 = vmatprep.subr.bf16.mxu0 %v2070_v9  ;;  %v531_v48 = vpack.c.bf16 %v525_v46, %v523_v45  ;;  %v524_v50 = vld [vmem:[%s2551_s19 + $0x50] sm:$0xff]  ;;  %v2103_v52 = vld [vmem:[#allocation8 + $0x48] sm:$0xff]   ;;  %v2105_v54 = vld [vmem:[#allocation8 + $0x58] sm:$0xff]   ;;  %v763_v60 = vunpack.c.0.s8 %v762_v58  ;;  %s2308_s19 = smov 88   ;;  %s2309_s23 = smov 112  }
  0x98   : > { %1120 = vmatpush1.bf16.msra.mxu1 %v2096_v22  ;;  %v530_v51 = vpack.c.bf16 %v524_v50, %v522_v49  ;;  %v2104_v53 = vld [vmem:[#allocation8 + $0x50] sm:$0xff]   ;;  %v2106_v55 = vld [vmem:[%s2919_s5] sm:$0xff]   ;;  %v2107_v56 = vld [vmem:[%s2919_s5 + $0x8] sm:$0xff]   ;;  %s1658_s27 = scalar_lea.sflag [#allocation5], %s2547_s18  ;;  %s2950_s8 = sld [smem:[#allocation15_spill]] }
  0x99   : > { %1121 = vmatprep.subr.bf16.mxu1 %v2301_v0  ;;  %v1844_v62 = vld.sshfl [vmem:[%s461_s30] sm:$0xff pattern:$0x75316420]  ;;  %v1845_v63 = vld.sshfl [vmem:[%s461_s30 + $0x8] sm:$0xff pattern:$0x75316420]  ;;  %v766_v2 = vsub.s32 %v763_v60, %v765_v61 }
  0x9a   : > { %695 = vmatpush1.bf16.msra.mxu0 %v2072_v10  ;;  %v760_v1 = vcombine.high %v1844_v62, %v1844_v62  ;;  %v784_v3 = vcombine.high %v1845_v63, %v1845_v63  ;;  %v803_v10 = vsub.s32 0, %v765_v61  ;;  %s1813_s30 = sshll.u32 %s2547_s18, 3 }
  0x9b   : > { %696 = vmatprep.subr.bf16.mxu0 %v2073_v11  ;;  %v767_v4 = vrot.slane %v1844_v62, %v766_v2  ;;  %v791_v6 = vrot.slane %v1845_v63, %v766_v2  ;;  %v807_v11 = vsub.s32 1, %v765_v61  ;;  %s2828_s9 = scalar_lea.vmem [#allocation9], %s1813_s30 }
  0x9c   : > { %1122 = vmatpush1.bf16.msra.mxu1 %v2097_v24  ;;  %v774_v5 = vrot.slane %v760_v1, %v766_v2  ;;  %v798_v7 = vrot.slane %v784_v3, %v766_v2 }
  0x9d   : > { %1123 = vmatprep.subr.bf16.mxu1 %v2301_v0  ;;  %v775_v8 = vcombine.high %v767_v4, %v767_v4  ;;  %v799_v12 = vcombine.high %v791_v6, %v791_v6  ;;  %v804_v14 = vrot.slane %v767_v4, %v803_v10  ;;  %v2603_v22 = vrot.slane %v791_v6, %v803_v10 }
  0x9e   : > { %697 = vmatpush1.bf16.msra.mxu0 %v2075_v15  ;;  %v776_v9 = vcombine.high %v774_v5, %v774_v5  ;;  %v800_v13 = vcombine.high %v798_v7, %v798_v7  ;;  %v812_v15 = vrot.slane %v774_v5, %v803_v10  ;;  %v816_v18 = vrot.slane %v774_v5, %v807_v11  ;;  %p2951_p12 = scmp.ne.s32.totalorder %s2950_s8, 0 }
  0x9f   : > { %698 = vmatprep.subr.bf16.mxu0 %v2076_v16  ;;  %v820_v16 = vrot.slane %v775_v8, %v803_v10  ;;  %v2607_v24 = vrot.slane %v799_v12, %v803_v10  ;;  %s1666_s28 = ssub.s32 (%p2951_p12), 3, %s2590_s21 }
  0xa0   : > { %1124 = vmatpush1.bf16.msra.mxu1 %v2098_v27  ;;  %v828_v17 = vrot.slane %v776_v9, %v803_v10  ;;  %v2611_v27 = vrot.slane %v791_v6, %v807_v11  ;;  %p1667_p13 = scmp.lt.s32.totalorder (%p2951_p12), %s1666_s28, 2 }
  0xa1   : > { %1125 = vmatprep.subr.bf16.mxu1 %v2301_v0 }
  0xa2   : > { %699 = vmatpush1.bf16.msra.mxu0 %v2078_v19  ;;  %v824_v19 = vrot.slane %v775_v8, %v807_v11 }
  0xa3   : > { %700 = vmatprep.subr.bf16.mxu0 %v2079_v20  ;;  %v832_v20 = vrot.slane %v776_v9, %v807_v11 }
  0xa4   : > { %1126 = vmatpush1.bf16.msra.mxu1 %v2099_v30  ;;  %v2617_v30 = vrot.slane %v800_v13, %v807_v11 }
  0xa5   : > { %1127 = vmatprep.subr.bf16.mxu1 %v2301_v0 }
  0xa6   : > { %701 = vmatpush1.bf16.msra.mxu0 %v2081_v21  ;;  %v808_v21 = vrot.slane %v767_v4, %v807_v11 }
  0xa7   : > { %702 = vmatprep.subr.bf16.mxu0 %v2082_v23  ;;  %v2605_v23 = vrot.slane %v798_v7, %v803_v10 }
  0xa8   : > { %1128 = vmatpush1.bf16.msra.mxu1 %v2100_v33 }
  0xa9   : > { %1129 = vmatprep.subr.bf16.mxu1 %v2301_v0 }
  0xaa   : > { %703 = vmatpush1.bf16.msra.mxu0 %v2084_v25  ;;  %v2609_v25 = vrot.slane %v800_v13, %v803_v10 }
  0xab   : > { %704 = vmatprep.subr.bf16.mxu0 %v2085_v26 }
  0xac   : > { %1130 = vmatpush1.bf16.msra.mxu1 %v2101_v40 }
  0xad   : > { %1131 = vmatprep.subr.bf16.mxu1 %v2301_v0 }
  0xae   : > { %705 = vmatpush1.bf16.msra.mxu0 %v2087_v28  ;;  %v2613_v28 = vrot.slane %v798_v7, %v807_v11 }
  0xaf   : > { %706 = vmatprep.subr.bf16.mxu0 %v2088_v29  ;;  %v2615_v29 = vrot.slane %v799_v12, %v807_v11 }
  0xb0   : > { %1132 = vmatpush1.bf16.msra.mxu1 %v2102_v42 }
  0xb1   : > { %1133 = vmatprep.subr.bf16.mxu1 %v2301_v0 }
  0xb2   : > { %707 = vmatpush1.bf16.msra.mxu0 %v2090_v31 }
  0xb3   : > { %708 = vmatprep.subr.bf16.mxu0 %v2091_v32 }
  0xb4   : > { %1134 = vmatpush1.bf16.msra.mxu1 %v2103_v52 }
  0xb5   : > { %1135 = vmatprep.subr.bf16.mxu1 %v2301_v0 }
  0xb6   : > { %709 = vmatpush1.bf16.msra.mxu0 %v2093_v34 }
  0xb7   : > { %1926 = vmatprep.subr.bf16.mxu0 %v2106_v55 }
  0xb8   : > { %1136 = vmatpush1.bf16.msra.mxu1 %v2104_v53 }
  0xb9   : > { %719 = vmatmul.mubr.bf16.vlgmr.msra.gmra.mrb[0].mxu0 %v526_v39  ;;  %1137 = vmatprep.subr.bf16.mxu1 %v2301_v0 }
  0xba   : > { %1842 = vmatprep.mubr.msk.bf16.mxu0 %vm676_vm0, %v529_v41  ;;  %1927 = vmatpush3.bf16.msra.mxu0 %v2106_v55 }
  0xbb   : > { %1928 = vmatprep.subr.bf16.mxu0 %v2107_v56 }
  0xbc   : > { %1138 = vmatpush1.bf16.msra.mxu1 %v2105_v54 }
  0xbd   : > { %1564 = vmatprep.subr.bf16.mxu1 %v2301_v0 }
  0xbe   : > { %1929 = vmatpush3.bf16.msra.mxu0 %v2107_v56 }
  0xc1   : > { %729 = vmatmul.mubr.bf16.gmra.mrb[4].mxu0 %v528_v47 }
  0xc2   : > { %1843 = vmatprep.mubr.msk.bf16.mxu0 %vm676_vm0, %v531_v48 }
  0xc9   : > { %739 = vmatmul.mubr.bf16.gmra.mrb[8].mxu0 %v530_v51 }
 0x18c   : > { %v720_v26 = vpop.f32.mrb[0].mxu0 }
 0x18d   : > { %v881_v31 = vadd.f32 %v804_v14, %v720_v26  ;;  %v2619_v32 = vadd.f32 %v812_v15, %v720_v26  ;;  %v2621_v33 = vadd.f32 %v820_v16, %v720_v26  ;;  %v2623_v34 = vadd.f32 %v828_v17, %v720_v26  ;;  %v722_v35 = vpop.f32.mrb[1].mxu0 }
 0x18e   : > { %v888_v36 = vadd.f32 %v816_v18, %v722_v35  ;;  %v2625_v37 = vadd.f32 %v824_v19, %v722_v35  ;;  %v2627_v38 = vadd.f32 %v832_v20, %v722_v35  ;;  %v724_v39 = vpop.f32.mrb[2].mxu0  ;;  %v882_v40 = vadd.f32 %v808_v21, %v722_v35 }
 0x18f   : > { %v883_v41 = vadd.f32 %v804_v14, %v724_v39  ;;  %v2629_v42 = vadd.f32 %v812_v15, %v724_v39  ;;  %v895_v43 = vadd.f32 %v820_v16, %v724_v39  ;;  %v2631_v44 = vadd.f32 %v828_v17, %v724_v39  ;;  %v726_v45 = vpop.f32.mrb[3].mxu0 }
 0x190   : > { %v936_v46 = vmax.f32 %v888_v36, 0.0  ;;  %v942_v47 = vmax.f32 %v2625_v37, 0.0  ;;  %v948_v48 = vmax.f32 %v2627_v38, 0.0  ;;  %v890_v49 = vadd.f32 %v816_v18, %v726_v45 }
 0x191   : > { %v896_v50 = vadd.f32 %v824_v19, %v726_v45  ;;  %v2635_v51 = vadd.f32 %v832_v20, %v726_v45  ;;  %v884_v52 = vadd.f32 %v808_v21, %v726_v45  ;;  %v930_v53 = vmax.f32 %v882_v40, 0.0 }
 0x192   : > { %v938_v54 = vmax.f32 %v890_v49, 0.0  ;;  %v929_v55 = vmax.f32 %v881_v31, 0.0  ;;  %v931_v56 = vmax.f32 %v883_v41, 0.0  ;;  %v935_v57 = vmax.f32 %v2619_v32, 0.0 }
 0x193   : > { %v944_v58 = vmax.f32 %v896_v50, 0.0  ;;  %v950_v59 = vmax.f32 %v2635_v51, 0.0  ;;  %v932_v60 = vmax.f32 %v884_v52, 0.0  ;;  %v937_v61 = vmax.f32 %v2629_v42, 0.0 }
 0x194   : > { %v730_v62 = vpop.f32.mrb[4].mxu0  ;;  %v977_v63 = vpack.c.bf16 %v931_v56, %v929_v55  ;;  %v941_v1 = vmax.f32 %v2621_v33, 0.0  ;;  %v943_v2 = vmax.f32 %v895_v43, 0.0  ;;  %v947_v3 = vmax.f32 %v2623_v34, 0.0 }
 0x195   : > { %v885_v4 = vadd.f32 %v804_v14, %v730_v62  ;;  %v891_v5 = vadd.f32 %v812_v15, %v730_v62  ;;  %v2642_v6 = vadd.f32 %v820_v16, %v730_v62  ;;  %v2644_v7 = vadd.f32 %v828_v17, %v730_v62  ;;  %v732_v8 = vpop.f32.mrb[5].mxu0 }
 0x196   : > { %v886_v9 = vadd.f32 %v808_v21, %v732_v8  ;;  %v892_v10 = vadd.f32 %v816_v18, %v732_v8  ;;  %v898_v11 = vadd.f32 %v824_v19, %v732_v8  ;;  %v904_v12 = vadd.f32 %v832_v20, %v732_v8  ;;  %v734_v13 = vpop.f32.mrb[6].mxu0 }
 0x197   : > { %v2647_v26 = vadd.f32 %v2603_v22, %v734_v13  ;;  %v2650_v31 = vadd.f32 %v2605_v23, %v734_v13  ;;  %v2653_v32 = vadd.f32 %v2607_v24, %v734_v13  ;;  %v2656_v14 = vadd.f32 %v2609_v25, %v734_v13  ;;  %v736_v15 = vpop.f32.mrb[7].mxu0 }
 0x198   : > { %v934_v16 = vmax.f32 %v886_v9, 0.0  ;;  %v940_v17 = vmax.f32 %v892_v10, 0.0  ;;  %v946_v21 = vmax.f32 %v898_v11, 0.0  ;;  %v952_v18 = vmax.f32 %v904_v12, 0.0 }
 0x199   : > { %v978_v19 = vpack.c.bf16 %v932_v60, %v930_v53  ;;  %v906_v20 = vadd.f32 %v2611_v27, %v736_v15  ;;  %v912_v33 = vadd.f32 %v2613_v28, %v736_v15  ;;  %v2661_v35 = vadd.f32 %v2615_v29, %v736_v15 }
 0x19a   : > { %v2664_v36 = vadd.f32 %v2617_v30, %v736_v15  ;;  %v980_v37 = vpack.c.bf16 %v936_v46, %v934_v16  ;;  %v933_v39 = vmax.f32 %v885_v4, 0.0  ;;  %v982_v40 = vpack.c.bf16 %v940_v17, %v938_v54 }
 0x19b   : > { %1859 = vmatprep.mubr.msk.bf16.mxu1 %vm676_vm0, %v978_v19  ;;  %v954_v41 = vmax.f32 %v906_v20, 0.0  ;;  %v960_v43 = vmax.f32 %v912_v33, 0.0  ;;  %v966_v45 = vmax.f32 %v2661_v35, 0.0  ;;  %v939_v49 = vmax.f32 %v891_v5, 0.0 }
 0x19c   : > { %v972_v50 = vmax.f32 %v2664_v36, 0.0  ;;  %1148 = vmatmul.mubr.bf16.vlgmr.msra.gmra.mrb[0].mxu1 %v977_v63  ;;  %v740_v52 = vpop.f32.mrb[8].mxu0  ;;  %v979_v53 = vpack.c.bf16 %v935_v57, %v933_v39  ;;  %v2669_v55 = vpack.c.bf16 %v944_v58, %v942_v47  ;;  %v2671_v56 = vpack.c.bf16 %v943_v2, %v941_v1 }
 0x19d   : > { %v907_v46 = vadd.f32 %v2603_v22, %v740_v52  ;;  %v913_v54 = vadd.f32 %v2605_v23, %v740_v52  ;;  %v919_v60 = vadd.f32 %v2607_v24, %v740_v52  ;;  %v925_v62 = vadd.f32 %v2609_v25, %v740_v52  ;;  %1860 = vmatprep.mubr.msk.bf16.mxu1 %vm676_vm0, %v980_v37  ;;  %v742_v4 = vpop.f32.mrb[9].mxu0 }
 0x19e   : > { %v908_v5 = vadd.f32 %v2611_v27, %v742_v4  ;;  %v914_v63 = vadd.f32 %v2613_v28, %v742_v4  ;;  %v920_v47 = vadd.f32 %v2615_v29, %v742_v4  ;;  %v926_v57 = vadd.f32 %v2617_v30, %v742_v4  ;;  %v744_v58 = vpop.f32.mrb[10].mxu0 }
 0x19f   : > { %v909_v1 = vadd.f32 %v2603_v22, %v744_v58  ;;  %v915_v2 = vadd.f32 %v2605_v23, %v744_v58  ;;  %v921_v8 = vadd.f32 %v2607_v24, %v744_v58  ;;  %v927_v9 = vadd.f32 %v2609_v25, %v744_v58  ;;  %v746_v10 = vpop.f32.mrb[11].mxu0 }
 0x1a0   : > { %v956_v11 = vmax.f32 %v908_v5, 0.0  ;;  %v962_v12 = vmax.f32 %v914_v63, 0.0  ;;  %v968_v13 = vmax.f32 %v920_v47, 0.0  ;;  %v974_v15 = vmax.f32 %v926_v57, 0.0 }
 0x1a1   : > { %v910_v16 = vadd.f32 %v2611_v27, %v746_v10  ;;  %v916_v17 = vadd.f32 %v2613_v28, %v746_v10  ;;  %v922_v19 = vadd.f32 %v2615_v29, %v746_v10  ;;  %v928_v20 = vadd.f32 %v2617_v30, %v746_v10 }
 0x1a2   : > { %v981_v22 = vpack.c.bf16 %v939_v49, %v937_v61  ;;  %v986_v23 = vpack.c.bf16 %v948_v48, %v946_v21  ;;  %v945_v24 = vmax.f32 %v2642_v6, 0.0  ;;  %v988_v25 = vpack.c.bf16 %v952_v18, %v950_v59 }
 0x1a3   : > { %v958_v33 = vmax.f32 %v910_v16, 0.0  ;;  %v964_v35 = vmax.f32 %v916_v17, 0.0  ;;  %v970_v27 = vmax.f32 %v922_v19, 0.0  ;;  %v976_v36 = vmax.f32 %v928_v20, 0.0 }
 0x1a4   : > { %1156 = vmatmul.mubr.bf16.gmra.mrb[4].mxu1 %v979_v53  ;;  %v985_v28 = vpack.c.bf16 %v947_v3, %v945_v24  ;;  %v949_v29 = vmax.f32 %v2631_v44, 0.0  ;;  %v951_v30 = vmax.f32 %v2644_v7, 0.0  ;;  %v990_v42 = vpack.c.bf16 %v956_v11, %v954_v41 }
 0x1a5   : > { %1861 = vmatprep.mubr.msk.bf16.mxu1 %vm676_vm0, %v982_v40  ;;  %v953_v38 = vmax.f32 %v2647_v26, 0.0  ;;  %v955_v48 = vmax.f32 %v907_v46, 0.0  ;;  %v992_v51 = vpack.c.bf16 %v960_v43, %v958_v33  ;;  %v957_v59 = vmax.f32 %v909_v1, 0.0 }
 0x1a6   : > { %v987_v61 = vpack.c.bf16 %v951_v30, %v949_v29  ;;  %v959_v6 = vmax.f32 %v2650_v31, 0.0  ;;  %v994_v21 = vpack.c.bf16 %v964_v35, %v962_v12  ;;  %v961_v18 = vmax.f32 %v913_v54, 0.0 }
 0x1a7   : > { %v989_v37 = vpack.c.bf16 %v955_v48, %v953_v38  ;;  %v963_v34 = vmax.f32 %v915_v2, 0.0  ;;  %v996_v3 = vpack.c.bf16 %v968_v13, %v966_v45  ;;  %v965_v44 = vmax.f32 %v2653_v32, 0.0  ;;  %v2108_v32 = vld [vmem:[%s2919_s5 + $0x10] sm:$0xff]   ;;  %v2110_v45 = vld [vmem:[%s2919_s5 + $0x20] sm:$0xff]  }
 0x1a8   : > { %v991_v39 = vpack.c.bf16 %v959_v6, %v957_v59  ;;  %v967_v7 = vmax.f32 %v919_v60, 0.0  ;;  %v998_v41 = vpack.c.bf16 %v972_v50, %v970_v27  ;;  %v969_v49 = vmax.f32 %v921_v8, 0.0  ;;  %1930 = vmatprep.subr.bf16.mxu0 %v2108_v32  ;;  %v2111_v50 = vld [vmem:[%s2919_s5 + $0x28] sm:$0xff]  }
 0x1a9   : > { %v993_v40 = vpack.c.bf16 %v963_v34, %v961_v18  ;;  %v971_v26 = vmax.f32 %v2656_v14, 0.0  ;;  %v1000_v52 = vpack.c.bf16 %v976_v36, %v974_v15  ;;  %v973_v43 = vmax.f32 %v925_v62, 0.0  ;;  %1931 = vmatpush3.bf16.msra.mxu0 %v2108_v32  ;;  %v2109_v14 = vld [vmem:[%s2919_s5 + $0x18] sm:$0xff]  }
 0x1aa   : > { %v995_v53 = vpack.c.bf16 %v967_v7, %v965_v44  ;;  %v975_v46 = vmax.f32 %v927_v9, 0.0  ;;  %1932 = vmatprep.subr.bf16.mxu0 %v2109_v14 }
 0x1ab   : > { %v997_v4 = vpack.c.bf16 %v971_v26, %v969_v49 }
 0x1ac   : > { %1164 = vmatmul.mubr.bf16.gmra.mrb[8].mxu1 %v981_v22  ;;  %v999_v31 = vpack.c.bf16 %v975_v46, %v973_v43 }
 0x1ad   : > { %1862 = vmatprep.mubr.msk.bf16.mxu1 %vm676_vm0, %v2669_v55  ;;  %1933 = vmatpush3.bf16.msra.mxu0 %v2109_v14  ;;  %v2733_v55 = vld [vmem:[%s2918_s4] ss:$0 sm:$0xff] }
 0x1ae   : > { %1934 = vmatprep.subr.bf16.mxu0 %v2110_v45 }
 0x1b1   : > { %1935 = vmatpush3.bf16.msra.mxu0 %v2110_v45 }
 0x1b2   : > { %1936 = vmatprep.subr.bf16.mxu0 %v2111_v50 }
 0x1b4   : > { %1172 = vmatmul.mubr.bf16.gmra.mrb[12].mxu1 %v2671_v56 }
 0x1b5   : > { %1863 = vmatprep.mubr.msk.bf16.mxu1 %vm676_vm0, %v986_v23  ;;  %1937 = vmatpush3.bf16.msra.mxu0 %v2111_v50 }
 0x1bc   : > { %1180 = vmatmul.mubr.bf16.gmra.mrb[16].mxu1 %v985_v28 }
 0x1bd   : > { %1864 = vmatprep.mubr.msk.bf16.mxu1 %vm676_vm0, %v988_v25 }
 0x1c4   : > { %1188 = vmatmul.mubr.bf16.gmra.mrb[20].mxu1 %v987_v61 }
 0x1c5   : > { %1865 = vmatprep.mubr.msk.bf16.mxu1 %vm676_vm0, %v990_v42 }
 0x1cc   : > { %1196 = vmatmul.mubr.bf16.gmra.mrb[24].mxu1 %v989_v37 }
 0x1cd   : > { %1866 = vmatprep.mubr.msk.bf16.mxu1 %vm676_vm0, %v992_v51 }
 0x1d4   : > { %1204 = vmatmul.mubr.bf16.gmra.mrb[28].mxu1 %v991_v39 }
 0x1d5   : > { %1867 = vmatprep.mubr.msk.bf16.mxu1 %vm676_vm0, %v994_v21 }
 0x1dc   : > { %1212 = vmatmul.mubr.bf16.gmra.mrb[32].mxu1 %v993_v40 }
 0x1dd   : > { %1868 = vmatprep.mubr.msk.bf16.mxu1 %vm676_vm0, %v996_v3 }
 0x1e4   : > { %1220 = vmatmul.mubr.bf16.gmra.mrb[36].mxu1 %v995_v53 }
 0x1e5   : > { %1869 = vmatprep.mubr.msk.bf16.mxu1 %vm676_vm0, %v998_v41 }
 0x1ec   : > { %1228 = vmatmul.mubr.bf16.gmra.mrb[40].mxu1 %v997_v4 }
 0x1ed   : > { %1870 = vmatprep.mubr.msk.bf16.mxu1 %vm676_vm0, %v1000_v52 }
 0x1f4   : > { %1236 = vmatmul.mubr.bf16.gmra.mrb[44].mxu1 %v999_v31 }
 0x1f5   : > { %1596 = vmatprep.mubr.bf16.mxu1 %v2301_v0 }
 0x26f   : > { %v1149_v56 = vpop.f32.mrb[0].mxu1 }
 0x270   : > { %v1150_v54 = vadd.f32 %v2733_v55, %v1149_v56  ;;  %v1151_v60 = vpop.f32.mrb[1].mxu1 }
 0x271   : > { %v1152_v62 = vpop.f32.mrb[2].mxu1 }
 0x272   : > { %v1153_v5 = vadd.f32 %v2733_v55, %v1152_v62  ;;  %v1154_v63 = vpop.f32.mrb[3].mxu1  ;;  %v1244_v47 = vmax.f32 %v1150_v54, 0.0 }
 0x274   : > { %v1245_v57 = vmax.f32 %v1153_v5, 0.0 }
 0x276   : > { %v1268_v58 = vpack.c.bf16 %v1245_v57, %v1244_v47 }
 0x277   : > { %v1157_v1 = vpop.f32.mrb[4].mxu1 }
 0x278   : > { %v1158_v2 = vadd.f32 %v2733_v55, %v1157_v1  ;;  %v1159_v8 = vpop.f32.mrb[5].mxu1  ;;  %1938 = vmatprep.mubr.msk.bf16.mxu0 %vm1322_vm1, %v1268_v58 }
 0x279   : > { %v1160_v9 = vpop.f32.mrb[6].mxu1 }
 0x27a   : > { %v1161_v10 = vadd.f32 %v2733_v55, %v1160_v9  ;;  %v1162_v11 = vpop.f32.mrb[7].mxu1  ;;  %v1246_v12 = vmax.f32 %v1158_v2, 0.0 }
 0x27c   : > { %v1247_v13 = vmax.f32 %v1161_v10, 0.0 }
 0x27e   : > { %v1269_v15 = vpack.c.bf16 %v1247_v13, %v1246_v12 }
 0x27f   : > { %v1165_v16 = vpop.f32.mrb[8].mxu1 }
 0x280   : > { %v1166_v17 = vadd.f32 %v2733_v55, %v1165_v16  ;;  %v1167_v19 = vpop.f32.mrb[9].mxu1  ;;  %1939 = vmatmul.mubr.msk.bf16.vlgmr.msra.gmra.mrb[12].mxu0 %vm1322_vm1, %v1269_v15 }
 0x281   : > { %v1168_v20 = vpop.f32.mrb[10].mxu1 }
 0x282   : > { %v1169_v22 = vadd.f32 %v2733_v55, %v1168_v20  ;;  %v1170_v23 = vpop.f32.mrb[11].mxu1  ;;  %v1248_v24 = vmax.f32 %v1166_v17, 0.0 }
 0x284   : > { %v1249_v25 = vmax.f32 %v1169_v22, 0.0 }
 0x286   : > { %v1270_v33 = vpack.c.bf16 %v1249_v25, %v1248_v24 }
 0x287   : > { %v1173_v35 = vpop.f32.mrb[12].mxu1 }
 0x288   : > { %v1174_v27 = vadd.f32 %v2733_v55, %v1173_v35  ;;  %v1175_v36 = vpop.f32.mrb[13].mxu1  ;;  %1942 = vmatprep.mubr.msk.bf16.mxu0 %vm1322_vm1, %v1270_v33 }
 0x289   : > { %v1176_v28 = vpop.f32.mrb[14].mxu1 }
 0x28a   : > { %v1177_v29 = vadd.f32 %v2733_v55, %v1176_v28  ;;  %v1178_v30 = vpop.f32.mrb[15].mxu1  ;;  %v1250_v42 = vmax.f32 %v1174_v27, 0.0 }
 0x28c   : > { %v1251_v38 = vmax.f32 %v1177_v29, 0.0 }
 0x28e   : > { %v1271_v48 = vpack.c.bf16 %v1251_v38, %v1250_v42 }
 0x28f   : > { %v1181_v51 = vpop.f32.mrb[16].mxu1 }
 0x290   : > { %v1182_v59 = vadd.f32 %v2733_v55, %v1181_v51  ;;  %v1183_v61 = vpop.f32.mrb[17].mxu1  ;;  %1943 = vmatmul.mubr.msk.bf16.gmra.mrb[16].mxu0 %vm1322_vm1, %v1271_v48 }
 0x291   : > { %v1184_v6 = vpop.f32.mrb[18].mxu1 }
 0x292   : > { %v1185_v21 = vadd.f32 %v2733_v55, %v1184_v6  ;;  %v1186_v18 = vpop.f32.mrb[19].mxu1  ;;  %v1252_v37 = vmax.f32 %v1182_v59, 0.0 }
 0x294   : > { %v1253_v34 = vmax.f32 %v1185_v21, 0.0 }
 0x296   : > { %v1272_v3 = vpack.c.bf16 %v1253_v34, %v1252_v37 }
 0x297   : > { %v1189_v44 = vpop.f32.mrb[20].mxu1 }
 0x298   : > { %v1190_v39 = vadd.f32 %v2733_v55, %v1189_v44  ;;  %v1191_v7 = vpop.f32.mrb[21].mxu1  ;;  %1946 = vmatprep.mubr.msk.bf16.mxu0 %vm1322_vm1, %v1272_v3 }
 0x299   : > { %v1192_v41 = vpop.f32.mrb[22].mxu1 }
 0x29a   : > { %v1193_v49 = vadd.f32 %v2733_v55, %v1192_v41  ;;  %v1194_v40 = vpop.f32.mrb[23].mxu1  ;;  %v1254_v26 = vmax.f32 %v1190_v39, 0.0  ;;  %v2774_v39 = vld [vmem:[%s2920_s6] ss:$0 sm:$0xff] }
 0x29c   : > { %v1255_v52 = vmax.f32 %v1193_v49, 0.0 }
 0x29e   : > { %v1273_v43 = vpack.c.bf16 %v1255_v52, %v1254_v26 }
 0x29f   : > { %v1197_v53 = vpop.f32.mrb[24].mxu1 }
 0x2a0   : > { %v1198_v46 = vadd.f32 %v2733_v55, %v1197_v53  ;;  %v1199_v4 = vpop.f32.mrb[25].mxu1  ;;  %1947 = vmatmul.mubr.msk.bf16.gmra.mrb[20].mxu0 %vm1322_vm1, %v1273_v43 }
 0x2a1   : > { %v1200_v31 = vpop.f32.mrb[26].mxu1 }
 0x2a2   : > { %v1201_v32 = vadd.f32 %v2733_v55, %v1200_v31  ;;  %v1202_v14 = vpop.f32.mrb[27].mxu1  ;;  %v1256_v45 = vmax.f32 %v1198_v46, 0.0 }
 0x2a4   : > { %v1257_v50 = vmax.f32 %v1201_v32, 0.0 }
 0x2a6   : > { %v1274_v56 = vpack.c.bf16 %v1257_v50, %v1256_v45 }
 0x2a7   : > { %v1205_v54 = vpop.f32.mrb[28].mxu1 }
 0x2a8   : > { %v1206_v60 = vadd.f32 %v2733_v55, %v1205_v54  ;;  %v1207_v62 = vpop.f32.mrb[29].mxu1  ;;  %1950 = vmatprep.mubr.msk.bf16.mxu0 %vm1322_vm1, %v1274_v56 }
 0x2a9   : > { %v1208_v5 = vpop.f32.mrb[30].mxu1 }
 0x2aa   : > { %v1209_v63 = vadd.f32 %v2733_v55, %v1208_v5  ;;  %v1210_v47 = vpop.f32.mrb[31].mxu1  ;;  %v1258_v57 = vmax.f32 %v1206_v60, 0.0 }
 0x2ac   : > { %v1259_v58 = vmax.f32 %v1209_v63, 0.0 }
 0x2ae   : > { %v1275_v1 = vpack.c.bf16 %v1259_v58, %v1258_v57 }
 0x2af   : > { %v1213_v2 = vpop.f32.mrb[32].mxu1 }
 0x2b0   : > { %v1214_v8 = vadd.f32 %v2733_v55, %v1213_v2  ;;  %v1215_v9 = vpop.f32.mrb[33].mxu1  ;;  %1951 = vmatmul.mubr.msk.bf16.gmra.mrb[24].mxu0 %vm1322_vm1, %v1275_v1 }
 0x2b1   : > { %v1216_v10 = vpop.f32.mrb[34].mxu1 }
 0x2b2   : > { %v1217_v11 = vadd.f32 %v2733_v55, %v1216_v10  ;;  %v1218_v12 = vpop.f32.mrb[35].mxu1  ;;  %v1260_v13 = vmax.f32 %v1214_v8, 0.0 }
 0x2b4   : > { %v1261_v15 = vmax.f32 %v1217_v11, 0.0 }
 0x2b6   : > { %v1276_v16 = vpack.c.bf16 %v1261_v15, %v1260_v13 }
 0x2b7   : > { %v1221_v17 = vpop.f32.mrb[36].mxu1 }
 0x2b8   : > { %v1222_v19 = vadd.f32 %v2733_v55, %v1221_v17  ;;  %v1223_v20 = vpop.f32.mrb[37].mxu1  ;;  %1954 = vmatprep.mubr.msk.bf16.mxu0 %vm1322_vm1, %v1276_v16 }
 0x2b9   : > { %v1224_v22 = vpop.f32.mrb[38].mxu1 }
 0x2ba   : > { %v1225_v23 = vadd.f32 %v2733_v55, %v1224_v22  ;;  %v1226_v24 = vpop.f32.mrb[39].mxu1  ;;  %v1262_v25 = vmax.f32 %v1222_v19, 0.0 }
 0x2bc   : > { %v1263_v33 = vmax.f32 %v1225_v23, 0.0 }
 0x2be   : > { %v1277_v35 = vpack.c.bf16 %v1263_v33, %v1262_v25 }
 0x2bf   : > { %v1229_v27 = vpop.f32.mrb[40].mxu1 }
 0x2c0   : > { %v1230_v36 = vadd.f32 %v2733_v55, %v1229_v27  ;;  %v1231_v28 = vpop.f32.mrb[41].mxu1  ;;  %1955 = vmatmul.mubr.msk.bf16.gmra.mrb[28].mxu0 %vm1322_vm1, %v1277_v35 }
 0x2c1   : > { %v1232_v29 = vpop.f32.mrb[42].mxu1 }
 0x2c2   : > { %v1233_v30 = vadd.f32 %v2733_v55, %v1232_v29  ;;  %v1234_v42 = vpop.f32.mrb[43].mxu1  ;;  %v1264_v38 = vmax.f32 %v1230_v36, 0.0 }
 0x2c4   : > { %v1265_v48 = vmax.f32 %v1233_v30, 0.0 }
 0x2c6   : > { %v1278_v51 = vpack.c.bf16 %v1265_v48, %v1264_v38 }
 0x2c7   : > { %v1237_v59 = vpop.f32.mrb[44].mxu1 }
 0x2c8   : > { %v1238_v61 = vadd.f32 %v2733_v55, %v1237_v59  ;;  %v1239_v6 = vpop.f32.mrb[45].mxu1  ;;  %1958 = vmatprep.mubr.msk.bf16.mxu0 %vm1322_vm1, %v1278_v51 }
 0x2c9   : > { %v1240_v21 = vpop.f32.mrb[46].mxu1 }
 0x2ca   : > { %v1241_v18 = vadd.f32 %v2733_v55, %v1240_v21  ;;  %v1242_v37 = vpop.f32.mrb[47].mxu1  ;;  %v1266_v34 = vmax.f32 %v1238_v61, 0.0 }
 0x2cc   : > { %v1267_v3 = vmax.f32 %v1241_v18, 0.0 }
 0x2ce   : > { %v1279_v44 = vpack.c.bf16 %v1267_v3, %v1266_v34 }
 0x2d0   : > { %1959 = vmatmul.mubr.msk.bf16.gmra.mrb[32].mxu0 %vm1322_vm1, %v1279_v44 }
 0x353   : > { %v1940_v7 = vpop.f32.mrb[12].mxu0 }
 0x354   : > { %v1402_v41 = vadd.f32 %v1940_v7, %v2774_v39  ;;  %v1393_v49 = vpop.f32.mrb[13].mxu0 }
 0x355   : > { %v1394_v40 = vadd.f32 %v2774_v39, %v1393_v49  ;;  %v1941_v26 = vpop.f32.mrb[14].mxu0 }
 0x356   : > { %v1405_v55 = vadd.f32 %v1941_v26, %v2774_v39  ;;  %v1396_v52 = vpop.f32.mrb[15].mxu0  ;;  %v1490_v53 = vmax.f32 %v1402_v41, 0.0 }
 0x357   : > { %v1397_v43 = vadd.f32 %v2774_v39, %v1396_v52  ;;  %v1488_v4 = vmax.f32 %v1394_v40, 0.0 }
 0x358   : > { %v1491_v46 = vmax.f32 %v1405_v55, 0.0 }
 0x359   : > { %v1489_v31 = vmax.f32 %v1397_v43, 0.0 }
 0x35a   : > { %v1513_v32 = vpack.c.bf16 %v1491_v46, %v1490_v53 }
 0x35b   : > { %v1512_v14 = vpack.c.bf16 %v1489_v31, %v1488_v4 }
 0x35c   : > { %v1532_v5 = vsel %vm1524_vm2, %v1513_v32, 0 }
 0x35d   : > { %v1529_v45 = vsel %vm1524_vm2, %v1512_v14, 0 }
 0x35e   : > { %1565 = vmatpush1.bf16.xpose.msra.mxu1 %v1529_v45 }
 0x35f   : > { %1566 = vmatprep.subr.bf16.mxu1 %v2301_v0 }
 0x363   : > { %v1944_v50 = vpop.f32.mrb[16].mxu0 }
 0x364   : > { %v1418_v56 = vadd.f32 %v1944_v50, %v2774_v39  ;;  %v1409_v54 = vpop.f32.mrb[17].mxu0 }
 0x365   : > { %v1410_v60 = vadd.f32 %v2774_v39, %v1409_v54  ;;  %v1945_v62 = vpop.f32.mrb[18].mxu0 }
 0x366   : > { %v1421_v63 = vadd.f32 %v1945_v62, %v2774_v39  ;;  %v1412_v47 = vpop.f32.mrb[19].mxu0  ;;  %1567 = vmatpush1.bf16.xpose.msra.mxu1 %v1532_v5  ;;  %v1494_v58 = vmax.f32 %v1418_v56, 0.0 }
 0x367   : > { %v1413_v57 = vadd.f32 %v2774_v39, %v1412_v47  ;;  %1568 = vmatprep.subr.bf16.mxu1 %v2301_v0  ;;  %v1492_v2 = vmax.f32 %v1410_v60, 0.0 }
 0x368   : > { %v1495_v1 = vmax.f32 %v1421_v63, 0.0 }
 0x369   : > { %v1493_v8 = vmax.f32 %v1413_v57, 0.0 }
 0x36a   : > { %v1515_v9 = vpack.c.bf16 %v1495_v1, %v1494_v58 }
 0x36b   : > { %v1514_v10 = vpack.c.bf16 %v1493_v8, %v1492_v2 }
 0x36c   : > { %v1538_v19 = vsel %vm1524_vm2, %v1515_v9, 0 }
 0x36d   : > { %v1535_v11 = vsel %vm1524_vm2, %v1514_v10, 0 }
 0x36e   : > { %1569 = vmatpush1.bf16.xpose.msra.mxu1 %v1535_v11 }
 0x36f   : > { %1570 = vmatprep.subr.bf16.mxu1 %v2301_v0 }
 0x373   : > { %v1948_v12 = vpop.f32.mrb[20].mxu0 }
 0x374   : > { %v1434_v13 = vadd.f32 %v1948_v12, %v2774_v39  ;;  %v1425_v15 = vpop.f32.mrb[21].mxu0 }
 0x375   : > { %v1426_v16 = vadd.f32 %v2774_v39, %v1425_v15  ;;  %v1949_v17 = vpop.f32.mrb[22].mxu0 }
 0x376   : > { %v1437_v20 = vadd.f32 %v1949_v17, %v2774_v39  ;;  %v1428_v22 = vpop.f32.mrb[23].mxu0  ;;  %1571 = vmatpush1.bf16.xpose.msra.mxu1 %v1538_v19  ;;  %v1498_v24 = vmax.f32 %v1434_v13, 0.0 }
 0x377   : > { %v1429_v23 = vadd.f32 %v2774_v39, %v1428_v22  ;;  %1572 = vmatprep.subr.bf16.mxu1 %v2301_v0  ;;  %v1496_v33 = vmax.f32 %v1426_v16, 0.0  ;;  %v1605_v16 = vstv %s513_s10 }
 0x378   : > { %v1499_v25 = vmax.f32 %v1437_v20, 0.0 }
 0x379   : > { %v1497_v35 = vmax.f32 %v1429_v23, 0.0 }
 0x37a   : > { %v1517_v27 = vpack.c.bf16 %v1499_v25, %v1498_v24 }
 0x37b   : > { %v1516_v36 = vpack.c.bf16 %v1497_v35, %v1496_v33 }
 0x37c   : > { %v1544_v51 = vsel %vm1524_vm2, %v1517_v27, 0 }
 0x37d   : > { %v1541_v28 = vsel %vm1524_vm2, %v1516_v36, 0 }
 0x37e   : > { %1573 = vmatpush1.bf16.xpose.msra.mxu1 %v1541_v28 }
 0x37f   : > { %1574 = vmatprep.subr.bf16.mxu1 %v2301_v0 }
 0x383   : > { %v1952_v29 = vpop.f32.mrb[24].mxu0 }
 0x384   : > { %v1450_v30 = vadd.f32 %v1952_v29, %v2774_v39  ;;  %v1441_v42 = vpop.f32.mrb[25].mxu0 }
 0x385   : > { %v1442_v38 = vadd.f32 %v2774_v39, %v1441_v42  ;;  %v1953_v48 = vpop.f32.mrb[26].mxu0 }
 0x386   : > { %v1453_v59 = vadd.f32 %v1953_v48, %v2774_v39  ;;  %v1444_v61 = vpop.f32.mrb[27].mxu0  ;;  %1575 = vmatpush1.bf16.xpose.msra.mxu1 %v1544_v51  ;;  %v1502_v21 = vmax.f32 %v1450_v30, 0.0 }
 0x387   : > { %v1445_v6 = vadd.f32 %v2774_v39, %v1444_v61  ;;  %1576 = vmatprep.subr.bf16.mxu1 %v2301_v0  ;;  %v1500_v37 = vmax.f32 %v1442_v38, 0.0 }
 0x388   : > { %v1503_v18 = vmax.f32 %v1453_v59, 0.0 }
 0x389   : > { %v1501_v34 = vmax.f32 %v1445_v6, 0.0 }
 0x38a   : > { %v1519_v3 = vpack.c.bf16 %v1503_v18, %v1502_v21 }
 0x38b   : > { %v1518_v44 = vpack.c.bf16 %v1501_v34, %v1500_v37 }
 0x38c   : > { %v1550_v52 = vsel %vm1524_vm2, %v1519_v3, 0 }
 0x38d   : > { %v1547_v7 = vsel %vm1524_vm2, %v1518_v44, 0 }
 0x38e   : > { %1577 = vmatpush1.bf16.xpose.msra.mxu1 %v1547_v7 }
 0x38f   : > { %1578 = vmatprep.subr.bf16.mxu1 %v2301_v0 }
 0x393   : > { %v1956_v41 = vpop.f32.mrb[28].mxu0 }
 0x394   : > { %v1466_v49 = vadd.f32 %v1956_v41, %v2774_v39  ;;  %v1457_v40 = vpop.f32.mrb[29].mxu0 }
 0x395   : > { %v1458_v26 = vadd.f32 %v2774_v39, %v1457_v40  ;;  %v1957_v55 = vpop.f32.mrb[30].mxu0 }
 0x396   : > { %v1469_v43 = vadd.f32 %v1957_v55, %v2774_v39  ;;  %v1460_v53 = vpop.f32.mrb[31].mxu0  ;;  %1579 = vmatpush1.bf16.xpose.msra.mxu1 %v1550_v52  ;;  %v1506_v4 = vmax.f32 %v1466_v49, 0.0 }
 0x397   : > { %v1461_v46 = vadd.f32 %v2774_v39, %v1460_v53  ;;  %1580 = vmatprep.subr.bf16.mxu1 %v2301_v0  ;;  %v1504_v32 = vmax.f32 %v1458_v26, 0.0 }
 0x398   : > { %v1507_v31 = vmax.f32 %v1469_v43, 0.0 }
 0x399   : > { %v1505_v14 = vmax.f32 %v1461_v46, 0.0 }
 0x39a   : > { %v1521_v45 = vpack.c.bf16 %v1507_v31, %v1506_v4 }
 0x39b   : > { %v1520_v50 = vpack.c.bf16 %v1505_v14, %v1504_v32 }
 0x39c   : > { %v1556_v47 = vsel %vm1524_vm2, %v1521_v45, 0 }
 0x39d   : > { %v1553_v56 = vsel %vm1524_vm2, %v1520_v50, 0 }
 0x39e   : > { %1581 = vmatpush1.bf16.xpose.msra.mxu1 %v1553_v56 }
 0x39f   : > { %1582 = vmatprep.subr.bf16.mxu1 %v2301_v0 }
 0x3a3   : > { %v1960_v54 = vpop.f32.mrb[32].mxu0 }
 0x3a4   : > { %v1482_v60 = vadd.f32 %v1960_v54, %v2774_v39  ;;  %v1473_v62 = vpop.f32.mrb[33].mxu0 }
 0x3a5   : > { %v1474_v5 = vadd.f32 %v2774_v39, %v1473_v62  ;;  %v1961_v63 = vpop.f32.mrb[34].mxu0 }
 0x3a6   : > { %v1485_v57 = vadd.f32 %v1961_v63, %v2774_v39  ;;  %v1476_v58 = vpop.f32.mrb[35].mxu0  ;;  %1583 = vmatpush1.bf16.xpose.msra.mxu1 %v1556_v47  ;;  %v1510_v2 = vmax.f32 %v1482_v60, 0.0 }
 0x3a7   : > { %v1477_v1 = vadd.f32 %v2774_v39, %v1476_v58  ;;  %1584 = vmatprep.subr.bf16.mxu1 %v2301_v0  ;;  %v1508_v9 = vmax.f32 %v1474_v5, 0.0  ;;  %v512_v39 = vld [vmem:[%s2921_s7] sm:$0xf] }
 0x3a8   : > { %v1511_v8 = vmax.f32 %v1485_v57, 0.0 }
 0x3a9   : > { %v1509_v10 = vmax.f32 %v1477_v1, 0.0 }
 0x3aa   : > { %v1523_v11 = vpack.c.bf16 %v1511_v8, %v1510_v2 }
 0x3ab   : > { %v1522_v12 = vpack.c.bf16 %v1509_v10, %v1508_v9 }
 0x3ac   : > { %v1562_v15 = vsel %vm1524_vm2, %v1523_v11, 0 }
 0x3ad   : > { %v1559_v13 = vsel %vm1524_vm2, %v1522_v12, 0 }
 0x3ae   : > { %1585 = vmatpush1.bf16.xpose.msra.mxu1 %v1559_v13 }
 0x3af   : > { %1586 = vmatprep.subr.bf16.mxu1 %v2301_v0 }
 0x3b6   : > { %1587 = vmatpush1.bf16.xpose.msra.mxu1 %v1562_v15 }
 0x3bd   : > { %1890 = vmatmul.mubr.msk.bf16.vlgmr.msra.gmra.mrb[48].mxu1 %vm1524_vm2, %v512_v39 }
 0x490   : > { %v1598_v17 = vpop.f32.mrb[48].mxu1 }
 0x491   : > { %v1606_v19 = vadd.f32 %v1605_v16, %v1598_v17  ;;  %v1600_v20 = vpop.f32.mrb[49].mxu1 }
 0x492   : > { %v1607_v22 = vadd.f32 %v1605_v16, %v1600_v20  ;;  %v1602_v23 = vpop.f32.mrb[50].mxu1 }
 0x493   : > { %v1891_v24 = vmul.f32 -1.442695, %v1606_v19  ;;  %v1603_v25 = vpop.f32.mrb[51].mxu1 }
 0x494   : > { %v1892_v0 = vmul.f32 -1.442695, %v1607_v22 }
 0x495   : > { %2112 = vpow2.f32 %v1891_v24 }
 0x496   : > { %2114 = vpow2.f32 %v1892_v0 }
 0x49f   : > { %v2113_v33 = vpop.eup %2112 }
 0x4a0   : > { %v1614_v35 = vadd.f32 1.0, %v2113_v33  ;;  %v2115_v27 = vpop.eup %2114 }
 0x4a1   : > { %v1615_v36 = vadd.f32 1.0, %v2115_v27 }
 0x4a2   : > { %2116 = vrcp.f32 %v1614_v35 }
 0x4a3   : > { %2118 = vrcp.f32 %v1615_v36 }
 0x4ac   : > { %v2117_v28 = vpop.eup %2116 }
 0x4ad   : > { %1623 = vrot.lane.b32.xlu1 %v2117_v28, %s2303_s20  ;;  %1641 = vrot.lane.b32.xlu0 %v2117_v28, %s2304_s29  ;;  %1621 = vst.msk [vmem:[%s2828_s9] sm:$0x1] %vm1620_vm3, %v2117_v28  ;;  %v2119_v29 = vpop.eup %2118 }
 0x4b1   : > { %1627 = vrot.lane.b32.xlu1 %v2117_v28, %s2305_s24  ;;  %1631 = vrot.lane.b32.xlu0 %v2117_v28, %s2306_s17 }
 0x4b5   : > { %1635 = vrot.lane.b32.xlu1 %v2117_v28, %s2307_s25  ;;  %1643 = vrot.lane.b32.xlu0 %v2119_v29, %s2304_s29 }
 0x4b9   : > { %1653 = vrot.lane.b32.xlu1 %v2119_v29, %s2308_s19  ;;  %1649 = vrot.lane.b32.xlu0 %v2119_v29, %s2309_s23 }
 0x51f   : > { %v1624_v30 = vpop.permute.xlu1 %1623  ;;  %v1642_v42 = vpop.permute.xlu0 %1641 }
 0x520   : > { %1626 = vst.msk [vmem:[%s2828_s9 + $0x1] sm:$0x1] %vm1620_vm3, %v1624_v30 }
 0x523   : > { %v1628_v38 = vpop.permute.xlu1 %1627  ;;  %v1632_v48 = vpop.permute.xlu0 %1631 }
 0x524   : > { %1630 = vst.msk [vmem:[%s2828_s9 + $0x2] sm:$0x1] %vm1620_vm3, %v1628_v38  ;;  %1634 = vst.msk [vmem:[%s2828_s9 + $0x3] sm:$0x1] %vm1620_vm3, %v1632_v48 }
 0x526   : > { %1664 = sbr.rel (!%p2951_p12) target bundleno = 1354 (0x54a), region = 72 }
 0x527   : > { %v1636_v51 = vpop.permute.xlu1 %1635  ;;  %v1644_v59 = vpop.permute.xlu0 %1643 }
 0x528   : > { %1893 = vst.msk [vmem:[%s2828_s9 + $0x4] sm:$0x1] %vm1620_vm3, %v1636_v51  ;;  %v1646_v61 = vsel %vm1645_vm4, %v1642_v42, %v1644_v59 }
 0x529   : > { %1894 = vst.msk [vmem:[%s2828_s9 + $0x5] sm:$0x1] %vm1620_vm3, %v1646_v61 }
 0x52b   : > { %v1654_v6 = vpop.permute.xlu1 %1653  ;;  %v1650_v21 = vpop.permute.xlu0 %1649 }
 0x52c   : > { %1896 = vst.msk [vmem:[%s2828_s9 + $0x7] sm:$0x1] %vm1620_vm3, %v1654_v6  ;;  %1895 = vst.msk [vmem:[%s2828_s9 + $0x6] sm:$0x1] %vm1620_vm3, %v1650_v21 }
 0x52d   : > { %s2968_s28 = smov (!%p1667_p13, %s1666_s28), 2 }
 0x52e   : > { %s2850_s26 = sshll.u32 %s2968_s28, 6 }
 0x52f   : > { %s1671_s11 = ssub.s32 128, %s2850_s26 }
 0x530   : > { %1672 = vsyncadd %s1658_s27, %s1671_s11  ;;  %p1900_p1 = scmp.ne.s32.totalorder %s2850_s26, 0  ;;  %s1907_s22 = sshll.u32 %s2282_s14, 7 }
 0x531   : > { %s2952_s20 = sld [smem:[#allocation18_spill]]  ;;  %s1678_s21 = sshll.u32 %s2828_s9, 4  ;;  %s2863_s21 = int_to_ptr.vmem [resolvable:$true] %s1678_s21 }
 0x532   : > { %s2204_s24 = scalar_lea.vmem %s2863_s21, %s2850_s26  ;;  %s2310_s17 = smov [#allocation9]  }
 0x533   : > { %p2205_p6 = scmp.ne.s32.totalorder %s2863_s21, %s2204_s24  ;;  %s2208_s25 = sshll.u32 %s2310_s17, 4  ;;  %s2209_s25 = int_to_ptr.vmem [resolvable:$false] %s2208_s25 }
 0x534   : > { %s2210_s14 = scalar_lea.vmem %s2209_s25, 256  ;;  %p2211_p8 = scmp.lt.s32.totalorder %s2863_s21, %s2209_s25 }
 0x535   : > { %p2206_p4 = pnand %p2205_p6, %p1900_p1  ;;  %p2212_p0 = scmp.lt.s32.totalorder %s2210_s14, %s2204_s24 }
 0x537   : > { %s2860_s29 = scalar_lea.hbm %s2952_s20, %s1907_s22  ;;  %p2207_p5 = pneg %p2206_p4 }
 0x538   : > { %p2213_p3 = por %p2212_p0, %p2211_p8 }
 0x53a   : > { %p2214_p9 = pnand %p2213_p3, %p2207_p5 }
 0x53c   : > { %2217 = shalt.err (!%p2214_p9)
}
 0x53d   : > { %s2218_s9 = scalar_lea.hbm %s2860_s29, %s2850_s26  ;;  %s2222_s8 = scalar_lea.hbm %s2952_s20, 192 }
 0x53e   : > { %p2219_p7 = scmp.ne.s32.totalorder %s2860_s29, %s2218_s9  ;;  %p2223_p12 = scmp.lt.u32.totalorder %s2860_s29, %s2952_s20 }
 0x53f   : > { %p2224_p13 = scmp.lt.u32.totalorder %s2222_s8, %s2218_s9  ;;  %p2226_p4 = scmp.lt.u32.totalorder %s2218_s9, %s2860_s29 }
 0x540   : > { %p2220_p2 = pnand %p2219_p7, %p1900_p1 }
 0x541   : > { %p2225_p6 = por %p2224_p13, %p2223_p12 }
 0x542   : > { %p2221_p10 = pneg %p2220_p2 }
 0x543   : > { %p2227_p5 = por %p2226_p4, %p2225_p6 }
 0x545   : > { %p2228_p8 = pnand %p2227_p5, %p2221_p10 }
 0x547   : > { %2231 = shalt.err (!%p2228_p8)
}
 0x548   : > { %s2311_s22 = smov 64   ;;  %s2312_s10 = smov 4  }
 0x549   : > { %1684 = dma.vmem_to_hbm [thread:$0]  (%p1900_p1), %s2863_s21, %s2850_s26, %s2860_s29, %s1658_s27, %s2311_s22, %s2311_s22, %s2312_s10  }
 0x54a PF: > { %s2953_s30 = sld [smem:[#allocation13_spill]]  ;;  %s2954_s24 = sld [smem:[#allocation17_spill]] }
 0x550   : > { %s1693_s17 = sand.u32 1, %s2953_s30   ;;  %p2955_p0 = scmp.ne.s32.totalorder %s2954_s24, 0 }
 0x551   : > { %s1694_s25 = scalar_lea.sflag [#allocation5], %s1693_s17 }
 0x552   : > { %p1983_p3 = pnand %p1800_p11, %p2955_p0 }
 0x554   : > { %2265 = dma.done.wait (!%p1983_p3), %s1694_s25, 128  }
 0x555   : > { %2267 = vsyncadd (!%p1983_p3), %s1694_s25, 4294967168  ;;  %s27_s16 = sadd.s32 1, %s2290_s16   ;;  %s2956_s14 = sld [smem:[#allocation16_spill]] }
 0x556   : > { %p24_p9 = scmp.ge.s32.totalorder %s27_s16, 4   ;;  %s2957_s18 = sld [smem:[#allocation14_spill]] }
 0x557   : > { %s2958_s11 = smov %s2274_s12  ;;  %s2959_s12 = smov %s2278_s13 }
 0x558   :  { %26 = sbr.rel (!%p24_p9) target bundleno = 10 (0xa), region = 113 }
 0x55b   : > { %s2960_s13 = smov %s2956_s14  ;;  %s2961_s14 = smov %s2286_s15 }
 0x55c   : > { %s2962_s15 = smov %s2957_s18 }
 0x55f   :  { %1699 = vsyncpa [#allocation4], 1 }
 0x560   :  { %1701 = vsyncpa [#allocation4 + $0x1], 1 }
 0x561   :  { %1702 = vsyncpa [#allocation7], 1 }
 0x562   :  { %1703 = vsyncpa [#allocation5], 1 }
 0x563   :  { %1705 = vsyncpa [#allocation5 + $0x1], 1 }

</bundles_post_ra>
